<compile_context>
chip_gen: v7x
topology: tpu7x:2x2x1
jax: 0.10.0
libtpu: 0.0.40
codegen_flags: <defaults>
</compile_context>

<pallas_src>
import functools
import math

import jax
import jax.numpy as jnp
import numpy as np
from jax.experimental import pallas as pl
from jax.experimental.pallas import tpu as pltpu

# --- Conv2dDCLLlayer / ContinuousConv2D default hyper-parameters -------------
ALPHA = 0.95
ALPHAS = 0.9
TAU_M = 1.0 / (1.0 - ALPHA)    # tau_m__dt  = 20.0
TAU_S = 1.0 / (1.0 - ALPHAS)   # tau_s__dt  = 10.0
KERNEL_SIZE = 5
PADDING = 2
STRIDE = 1
DILATION = 1
LC_AMPL = 0.5

# TODO(synk): only the default conv geometry (stride=1, dilation=1, padding=2,
# groups=1) is implemented by the banded-weight construction below.
# TODO(synk): random_tau and the refractory (wrp>0) variant are not implemented.


# --- Pallas kernels -----------------------------------------------------------
def _conv_dcll_kernel(x_ref, w_ref, b_ref, e0_ref, e1_ref,
                      spk_ref, pv_ref, e0o_ref, e1o_ref, *, H, KH):
    """One batch element per grid step.

    x_ref : (1, Hp, Wp*Cin)    padded input, (w, cin) flattened into lanes
    w_ref : (KH, Wp*Cin, W*Cout) bf16 banded conv weight (kw taps folded in)
    b_ref : (1, W*Cout)        bias tiled per output column
    e0/e1 : (1, H, W*Cout)     previous neuron state (aliased to e0o/e1o in HBM)
    """
    xp = x_ref[0]                                      # (Hp, Wp*Cin) f32
    acc = jnp.zeros(e0o_ref.shape[1:], jnp.float32)    # (H, W*Cout)
    for kh in range(KH):                               # 5 banded matmuls, fused im2col
        lhs = x_ref[0, kh:kh + H, :].astype(jnp.bfloat16)
        acc = acc + jnp.dot(lhs, w_ref[kh], preferred_element_type=jnp.float32)
    conv = acc + b_ref[...]
    # input_sw * tau_s__dt + alphas * eps0 ; alpha * eps1 + eps0 * tau_m__dt
    eps0 = conv * TAU_S + ALPHAS * e0_ref[0]
    eps1 = ALPHA * e1_ref[0] + eps0 * TAU_M            # pvmem == eps1
    e0o_ref[0] = eps0
    e1o_ref[0] = eps1
    pv_ref[0] = jax.nn.sigmoid(eps1)                   # act = nn.Sigmoid()
    spk_ref[0] = (eps1 > 0.0).astype(jnp.float32)      # spiking output_act
    del xp


def _readout_kernel(x_ref, w_ref, b_ref, o_ref):
    # x_ref: (B, H*W*Cout) f32, w_ref: (H*W*Cout, T_pad) f32, b_ref: (1, T_pad)
    o_ref[...] = (jnp.dot(x_ref[...], w_ref[...],
                          preferred_element_type=jnp.float32) + b_ref[...])


# --- one-time parameter preparation (hoisted out of the per-step path) --------
def prepare_params(conv_w, conv_b, i2o_w, i2o_b, im_dims):
    """Build the banded conv weight, tiled bias and HWC-permuted/padded readout."""
    H, W = im_dims
    Cout, Cin, KH, KW = conv_w.shape
    Wp = W + 2 * PADDING
    WC = W * Cout

    # w_big[kh, wcol*Cin + c, w*Cout + o] = conv_w[o, c, kh, wcol - w] (0 <= wcol-w < KW)
    w_t = jnp.transpose(conv_w, (2, 3, 1, 0)).astype(jnp.float32)  # (KH, KW, Cin, Cout)
    w_big = jnp.zeros((KH, Wp * Cin, WC), jnp.float32)
    for wo in range(W):
        for kw in range(KW):
            w_big = w_big.at[:, (wo + kw) * Cin:(wo + kw + 1) * Cin,
                             wo * Cout:(wo + 1) * Cout].set(w_t[:, kw])
    w_big = w_big.astype(jnp.bfloat16)                 # bf16 MXU path, f32 accumulate
    b_big = jnp.tile(conv_b.astype(jnp.float32), W).reshape(1, WC)

    # i2o readout weight in the kernel's (h, w, c) flatten order, target padded to 128 lanes.
    T = i2o_w.shape[0]
    T_pad = ((T + 127) // 128) * 128
    wr = jnp.transpose(i2o_w.reshape(T, Cout, H, W), (2, 3, 1, 0)).reshape(H * W * Cout, T)
    wr = jnp.pad(wr, ((0, 0), (0, T_pad - T))).astype(jnp.float32)
    b_lc = jnp.pad(i2o_b.astype(jnp.float32), (0, T_pad - T)).reshape(1, T_pad)
    return w_big, b_big, wr, b_lc


def init_hiddens(batch_size, im_dims, out_channels, init_value=0.0):
    """init_hiddens equivalent; state is carried in the kernel layout (B, H, W*Cout)."""
    H, W = im_dims
    z = jnp.full((batch_size, H, W * out_channels), init_value, jnp.float32)
    return z, z


def _state_to_nchw(a, cout):
    b, h, wc = a.shape
    w = wc // cout
    return jnp.transpose(a.reshape(b, h, w, cout), (0, 3, 1, 2))


# --- wrapper (Conv2dDCLLlayer.forward, one timestep) ---------------------------
@functools.partial(jax.jit, static_argnames=("target",))
def conv2d_dcll_forward(x_nchw, w_big, b_big, wr, b_lc, eps0, eps1, *, target):
    """Returns (custom_output, pvoutput, pv, pvmem, eps0_new, eps1_new).

    x_nchw : (B, Cin, H, W); eps0/eps1: (B, H, W*Cout) kernel-layout state.
    custom_output/pv/pvmem are NCHW (module layout); new state stays in kernel layout.
    """
    B, Cin, H, W = x_nchw.shape
    KH = w_big.shape[0]
    WC = eps0.shape[2]
    Cout = WC // W
    P = PADDING
    Hp, Wp = H + 2 * P, W + 2 * P
    assert w_big.shape[1] == Wp * Cin and w_big.shape[2] == WC

    # NCHW -> NHWC, zero-pad the halo, flatten (w, cin) into the lane dim.
    x_nhwc = jnp.transpose(x_nchw, (0, 2, 3, 1))
    x_flat = jnp.pad(x_nhwc, ((0, 0), (P, P), (P, P), (0, 0))).reshape(B, Hp, Wp * Cin)

    state_spec = pl.BlockSpec((1, H, WC), lambda b: (b, 0, 0))
    conv_cost = pl.CostEstimate(
        flops=2 * B * KH * H * (Wp * Cin) * WC,
        transcendentals=B * H * WC,
        bytes_accessed=(x_flat.size * 4 + w_big.size * 2 + b_big.size * 4
                        + 6 * B * H * WC * 4))

    # TODO(synk): for images too large for one per-batch VMEM block, add a second
    # grid axis over output rows with halo handling (manual DMA or Element specs).
    spk, pv_k, eps0_new, eps1_new = pl.pallas_call(
        functools.partial(_conv_dcll_kernel, H=H, KH=KH),
        grid=(B,),
        in_specs=[
            pl.BlockSpec((1, Hp, Wp * Cin), lambda b: (b, 0, 0)),
            pl.BlockSpec((KH, Wp * Cin, WC), lambda b: (0, 0, 0)),
            pl.BlockSpec((1, WC), lambda b: (0, 0)),
            state_spec,
            state_spec,
        ],
        out_specs=[state_spec, state_spec, state_spec, state_spec],
        out_shape=[jax.ShapeDtypeStruct((B, H, WC), jnp.float32)] * 4,
        input_output_aliases={3: 2, 4: 3},     # eps0 -> eps0_new, eps1 -> eps1_new
        compiler_params=pltpu.CompilerParams(
            dimension_semantics=("parallel",),
            vmem_limit_bytes=32 * 1024 * 1024),
        cost_estimate=conv_cost,
    )(x_flat, w_big, b_big, eps0, eps1)

    # i2o readout directly on the kernel-layout pv (no NCHW round-trip);
    # pooling=None and lc_dropout=False are identity.
    T_pad = wr.shape[1]
    pv_flat = pv_k.reshape(B, H * W * Cout)
    vmem = pl.BlockSpec(memory_space=pltpu.MemorySpace.VMEM)
    pvout_pad = pl.pallas_call(
        _readout_kernel,
        out_shape=jax.ShapeDtypeStruct((B, T_pad), jnp.float32),
        in_specs=[vmem, vmem, vmem],
        out_specs=vmem,
        compiler_params=pltpu.CompilerParams(vmem_limit_bytes=32 * 1024 * 1024),
        cost_estimate=pl.CostEstimate(
            flops=2 * B * H * W * Cout * T_pad,
            transcendentals=0,
            bytes_accessed=(pv_flat.size + wr.size + b_lc.size + B * T_pad) * 4),
    )(pv_flat, wr, b_lc)
    pvoutput = pvout_pad[:, :target]

    def to_nchw(a):
        return jnp.transpose(a.reshape(B, H, W, Cout), (0, 3, 1, 2))

    custom_output = to_nchw(spk)          # output_layer=False -> custom_output = output
    pv_nchw = to_nchw(pv_k)
    pvmem_nchw = to_nchw(eps1_new)        # pvmem == eps1
    return custom_output, pvoutput, pv_nchw, pvmem_nchw, eps0_new, eps1_new


# --- pure-JAX reference for validation ----------------------------------------
def _reference_step(x, conv_w, conv_b, i2o_w, i2o_b, eps0, eps1, conv_dtype):
    conv = jax.lax.conv_general_dilated(
        x.astype(conv_dtype), conv_w.astype(conv_dtype),
        window_strides=(STRIDE, STRIDE),
        padding=((PADDING, PADDING), (PADDING, PADDING)),
        dimension_numbers=('NCHW', 'OIHW', 'NCHW'),
        precision=jax.lax.Precision.HIGHEST,
        preferred_element_type=jnp.float32) + conv_b[None, :, None, None]
    eps0_n = conv * TAU_S + ALPHAS * eps0
    eps1_n = ALPHA * eps1 + eps0_n * TAU_M
    pvmem = eps1_n
    pv = jax.nn.sigmoid(pvmem)
    spk = (pvmem > 0).astype(jnp.float32)
    flat = pv.reshape(pv.shape[0], -1)
    pvout = jnp.dot(flat, i2o_w.T, precision=jax.lax.Precision.HIGHEST) + i2o_b
    return spk, pvout, pv, pvmem, eps0_n, eps1_n


if __name__ == "__main__":
    B, Cin, Cout, H, W = 2, 4, 8, 16, 16
    K = KERNEL_SIZE
    TARGET = 10

    key = jax.random.PRNGKey(0)
    kw_, kb_, klw, klb, kx1, kx2 = jax.random.split(key, 6)

    # ContinuousConv2D.reset_parameters
    n = Cin * K * K
    stdv = 1.0 / math.sqrt(n) / 250.0
    conv_w = jax.random.uniform(kw_, (Cout, Cin, K, K), jnp.float32,
                                minval=-stdv * 0.01, maxval=stdv * 0.01)
    conv_b = jax.random.uniform(kb_, (Cout,), jnp.float32, minval=-stdv, maxval=stdv)

    # Conv2dDCLLlayer.reset_lc_parameters (frozen i2o readout)
    flat_size = Cout * H * W
    stdv_lc = LC_AMPL / math.sqrt(flat_size)
    i2o_w = jax.random.uniform(klw, (TARGET, flat_size), jnp.float32,
                               minval=-stdv_lc, maxval=stdv_lc)
    i2o_b = jax.random.uniform(klb, (TARGET,), jnp.float32,
                               minval=-stdv_lc, maxval=stdv_lc)

    xs = [jax.random.uniform(kx1, (B, Cin, H, W), jnp.float32),
          jax.random.uniform(kx2, (B, Cin, H, W), jnp.float32)]

    w_big, b_big, wr, b_lc = prepare_params(conv_w, conv_b, i2o_w, i2o_b, (H, W))
    eps0, eps1 = init_hiddens(B, (H, W), Cout)              # init_hiddens(init_value=0)

    # Two reference state chains: bf16-matched (kernel precision policy) and pure f32.
    r_e0 = jnp.zeros((B, Cout, H, W), jnp.float32); r_e1 = r_e0
    f_e0 = r_e0; f_e1 = r_e0

    for x in xs:                                            # two timesteps: exercise state carry
        outs = jax.block_until_ready(
            conv2d_dcll_forward(x, w_big, b_big, wr, b_lc, eps0, eps1, target=TARGET))
        custom_output, pvoutput, pv, pvmem, eps0, eps1 = outs

        r_spk, r_pvout, r_pv, r_pvmem, r_e0, r_e1 = _reference_step(
            x, conv_w, conv_b, i2o_w, i2o_b, r_e0, r_e1, jnp.bfloat16)
        f_spk, f_pvout, f_pv, f_pvmem, f_e0, f_e1 = _reference_step(
            x, conv_w, conv_b, i2o_w, i2o_b, f_e0, f_e1, jnp.float32)

        assert custom_output.shape == (B, Cout, H, W)
        assert pv.shape == (B, Cout, H, W) and pvmem.shape == (B, Cout, H, W)
        assert pvoutput.shape == (B, TARGET)
        assert eps0.shape == (B, H, W * Cout) and eps1.shape == (B, H, W * Cout)

        # Tight check vs a reference using the kernel's precision policy
        # (bf16 conv inputs, f32 accumulation).
        np.testing.assert_allclose(np.asarray(pvmem), np.asarray(r_pvmem),
                                   rtol=1e-3, atol=1e-6)
        np.testing.assert_allclose(np.asarray(pv), np.asarray(r_pv),
                                   rtol=1e-3, atol=1e-6)
        np.testing.assert_allclose(np.asarray(_state_to_nchw(eps0, Cout)),
                                   np.asarray(r_e0), rtol=1e-3, atol=1e-6)
        np.testing.assert_allclose(np.asarray(pvoutput), np.asarray(r_pvout),
                                   rtol=2e-2, atol=3e-3)
        # Spikes: threshold-at-zero; only compare where pvmem is safely away from 0.
        mask = np.abs(np.asarray(r_pvmem)) > 1e-5
        np.testing.assert_array_equal(np.asarray(custom_output)[mask],
                                      np.asarray(r_spk)[mask])

        # Loose sanity check vs the full-f32 torch-semantics reference
        # (difference == bf16 rounding of the conv inputs).
        np.testing.assert_allclose(np.asarray(pvmem), np.asarray(f_pvmem), atol=4e-3)
        np.testing.assert_allclose(np.asarray(pv), np.asarray(f_pv), atol=1e-3)
        np.testing.assert_allclose(np.asarray(pvoutput), np.asarray(f_pvout), atol=5e-3)

    print("KERNEL_OK")
</pallas_src>

<mosaic_0001>
module attributes {stable_mosaic.version = 11 : i64} {
  func.func @_conv_dcll_kernel(%arg0: i32, %arg1: memref<1x20x80xf32, #tpu.memory_space<vmem>>, %arg2: memref<5x80x128xbf16, #tpu.memory_space<vmem>>, %arg3: memref<1x128xf32, #tpu.memory_space<vmem>>, %arg4: memref<1x16x128xf32, #tpu.memory_space<vmem>>, %arg5: memref<1x16x128xf32, #tpu.memory_space<vmem>>, %arg6: memref<1x16x128xf32, #tpu.memory_space<vmem>>, %arg7: memref<1x16x128xf32, #tpu.memory_space<vmem>>, %arg8: memref<1x16x128xf32, #tpu.memory_space<vmem>>, %arg9: memref<1x16x128xf32, #tpu.memory_space<vmem>>) attributes {dimension_semantics = [#tpu.dimension_semantics<parallel>], iteration_bounds = array<i64: 2>, scalar_prefetch = 0 : i64, scratch_operands = 0 : i64, tpu.core_type = #tpu.core_type<tc>, window_params = [{transform_indices = @transform_0, window_bounds = array<i64: 1, 20, 80>}, {pipeline_mode = #tpu.pipeline_mode<synchronous>, transform_indices = @transform_1, window_bounds = array<i64: 5, 80, 128>}, {pipeline_mode = #tpu.pipeline_mode<synchronous>, transform_indices = @transform_2, window_bounds = array<i64: 1, 128>}, {transform_indices = @transform_3, window_bounds = array<i64: 1, 16, 128>}, {transform_indices = @transform_4, window_bounds = array<i64: 1, 16, 128>}, {transform_indices = @transform_5, window_bounds = array<i64: 1, 16, 128>}, {transform_indices = @transform_6, window_bounds = array<i64: 1, 16, 128>}, {transform_indices = @transform_7, window_bounds = array<i64: 1, 16, 128>}, {transform_indices = @transform_8, window_bounds = array<i64: 1, 16, 128>}]} {
    %cst = arith.constant 0.000000e+00 : f32
    %0 = vector.broadcast %cst : f32 to vector<16x128xf32>
    %c0 = arith.constant 0 : index
    %c0_0 = arith.constant 0 : index
    %c0_1 = arith.constant 0 : index
    %1 = vector.load %arg1[%c0, %c0_0, %c0_1] : memref<1x20x80xf32, #tpu.memory_space<vmem>>, vector<1x16x80xf32>
    %2 = vector.shape_cast %1 : vector<1x16x80xf32> to vector<16x80xf32>
    %3 = arith.truncf %2 : vector<16x80xf32> to vector<16x80xbf16>
    %c0_2 = arith.constant 0 : index
    %c0_3 = arith.constant 0 : index
    %c0_4 = arith.constant 0 : index
    %4 = vector.load %arg2[%c0_2, %c0_3, %c0_4] : memref<5x80x128xbf16, #tpu.memory_space<vmem>>, vector<1x80x128xbf16>
    %5 = vector.shape_cast %4 : vector<1x80x128xbf16> to vector<80x128xbf16>
    %cst_5 = arith.constant dense<0.000000e+00> : vector<16x128xf32>
    %6 = tpu.matmul %3, %5, %cst_5 {dimension_numbers = #tpu.dot_dimension_numbers<[1], [0], [0], [1], [0, 0, 1, 1], [], []>} : vector<16x80xbf16>, vector<80x128xbf16>, vector<16x128xf32> -> vector<16x128xf32>
    %7 = arith.addf %0, %6 : vector<16x128xf32>
    %c0_6 = arith.constant 0 : index
    %c1 = arith.constant 1 : index
    %c0_7 = arith.constant 0 : index
    %8 = vector.load %arg1[%c0_6, %c1, %c0_7] : memref<1x20x80xf32, #tpu.memory_space<vmem>>, vector<1x16x80xf32>
    %9 = vector.shape_cast %8 : vector<1x16x80xf32> to vector<16x80xf32>
    %10 = arith.truncf %9 : vector<16x80xf32> to vector<16x80xbf16>
    %c1_8 = arith.constant 1 : index
    %c0_9 = arith.constant 0 : index
    %c0_10 = arith.constant 0 : index
    %11 = vector.load %arg2[%c1_8, %c0_9, %c0_10] : memref<5x80x128xbf16, #tpu.memory_space<vmem>>, vector<1x80x128xbf16>
    %12 = vector.shape_cast %11 : vector<1x80x128xbf16> to vector<80x128xbf16>
    %cst_11 = arith.constant dense<0.000000e+00> : vector<16x128xf32>
    %13 = tpu.matmul %10, %12, %cst_11 {dimension_numbers = #tpu.dot_dimension_numbers<[1], [0], [0], [1], [0, 0, 1, 1], [], []>} : vector<16x80xbf16>, vector<80x128xbf16>, vector<16x128xf32> -> vector<16x128xf32>
    %14 = arith.addf %7, %13 : vector<16x128xf32>
    %c0_12 = arith.constant 0 : index
    %c2 = arith.constant 2 : index
    %c0_13 = arith.constant 0 : index
    %15 = vector.load %arg1[%c0_12, %c2, %c0_13] : memref<1x20x80xf32, #tpu.memory_space<vmem>>, vector<1x16x80xf32>
    %16 = vector.shape_cast %15 : vector<1x16x80xf32> to vector<16x80xf32>
    %17 = arith.truncf %16 : vector<16x80xf32> to vector<16x80xbf16>
    %c2_14 = arith.constant 2 : index
    %c0_15 = arith.constant 0 : index
    %c0_16 = arith.constant 0 : index
    %18 = vector.load %arg2[%c2_14, %c0_15, %c0_16] : memref<5x80x128xbf16, #tpu.memory_space<vmem>>, vector<1x80x128xbf16>
    %19 = vector.shape_cast %18 : vector<1x80x128xbf16> to vector<80x128xbf16>
    %cst_17 = arith.constant dense<0.000000e+00> : vector<16x128xf32>
    %20 = tpu.matmul %17, %19, %cst_17 {dimension_numbers = #tpu.dot_dimension_numbers<[1], [0], [0], [1], [0, 0, 1, 1], [], []>} : vector<16x80xbf16>, vector<80x128xbf16>, vector<16x128xf32> -> vector<16x128xf32>
    %21 = arith.addf %14, %20 : vector<16x128xf32>
    %c0_18 = arith.constant 0 : index
    %c3 = arith.constant 3 : index
    %c0_19 = arith.constant 0 : index
    %22 = vector.load %arg1[%c0_18, %c3, %c0_19] : memref<1x20x80xf32, #tpu.memory_space<vmem>>, vector<1x16x80xf32>
    %23 = vector.shape_cast %22 : vector<1x16x80xf32> to vector<16x80xf32>
    %24 = arith.truncf %23 : vector<16x80xf32> to vector<16x80xbf16>
    %c3_20 = arith.constant 3 : index
    %c0_21 = arith.constant 0 : index
    %c0_22 = arith.constant 0 : index
    %25 = vector.load %arg2[%c3_20, %c0_21, %c0_22] : memref<5x80x128xbf16, #tpu.memory_space<vmem>>, vector<1x80x128xbf16>
    %26 = vector.shape_cast %25 : vector<1x80x128xbf16> to vector<80x128xbf16>
    %cst_23 = arith.constant dense<0.000000e+00> : vector<16x128xf32>
    %27 = tpu.matmul %24, %26, %cst_23 {dimension_numbers = #tpu.dot_dimension_numbers<[1], [0], [0], [1], [0, 0, 1, 1], [], []>} : vector<16x80xbf16>, vector<80x128xbf16>, vector<16x128xf32> -> vector<16x128xf32>
    %28 = arith.addf %21, %27 : vector<16x128xf32>
    %c0_24 = arith.constant 0 : index
    %c4 = arith.constant 4 : index
    %c0_25 = arith.constant 0 : index
    %29 = vector.load %arg1[%c0_24, %c4, %c0_25] : memref<1x20x80xf32, #tpu.memory_space<vmem>>, vector<1x16x80xf32>
    %30 = vector.shape_cast %29 : vector<1x16x80xf32> to vector<16x80xf32>
    %31 = arith.truncf %30 : vector<16x80xf32> to vector<16x80xbf16>
    %c4_26 = arith.constant 4 : index
    %c0_27 = arith.constant 0 : index
    %c0_28 = arith.constant 0 : index
    %32 = vector.load %arg2[%c4_26, %c0_27, %c0_28] : memref<5x80x128xbf16, #tpu.memory_space<vmem>>, vector<1x80x128xbf16>
    %33 = vector.shape_cast %32 : vector<1x80x128xbf16> to vector<80x128xbf16>
    %cst_29 = arith.constant dense<0.000000e+00> : vector<16x128xf32>
    %34 = tpu.matmul %31, %33, %cst_29 {dimension_numbers = #tpu.dot_dimension_numbers<[1], [0], [0], [1], [0, 0, 1, 1], [], []>} : vector<16x80xbf16>, vector<80x128xbf16>, vector<16x128xf32> -> vector<16x128xf32>
    %35 = arith.addf %28, %34 : vector<16x128xf32>
    %c0_30 = arith.constant 0 : index
    %c0_31 = arith.constant 0 : index
    %36 = vector.load %arg3[%c0_30, %c0_31] : memref<1x128xf32, #tpu.memory_space<vmem>>, vector<1x128xf32>
    %37 = vector.broadcast %36 : vector<1x128xf32> to vector<16x128xf32>
    %38 = arith.addf %35, %37 : vector<16x128xf32>
    %cst_32 = arith.constant 1.000000e+01 : f32
    %39 = vector.broadcast %cst_32 : f32 to vector<16x128xf32>
    %40 = arith.mulf %38, %39 : vector<16x128xf32>
    %c0_33 = arith.constant 0 : index
    %c0_34 = arith.constant 0 : index
    %c0_35 = arith.constant 0 : index
    %41 = vector.load %arg4[%c0_33, %c0_34, %c0_35] : memref<1x16x128xf32, #tpu.memory_space<vmem>>, vector<1x16x128xf32>
    %42 = vector.shape_cast %41 : vector<1x16x128xf32> to vector<16x128xf32>
    %cst_36 = arith.constant 0.899999976 : f32
    %43 = vector.broadcast %cst_36 : f32 to vector<16x128xf32>
    %44 = arith.mulf %43, %42 : vector<16x128xf32>
    %45 = arith.addf %40, %44 : vector<16x128xf32>
    %c0_37 = arith.constant 0 : index
    %c0_38 = arith.constant 0 : index
    %c0_39 = arith.constant 0 : index
    %46 = vector.load %arg5[%c0_37, %c0_38, %c0_39] : memref<1x16x128xf32, #tpu.memory_space<vmem>>, vector<1x16x128xf32>
    %47 = vector.shape_cast %46 : vector<1x16x128xf32> to vector<16x128xf32>
    %cst_40 = arith.constant 0.949999988 : f32
    %48 = vector.broadcast %cst_40 : f32 to vector<16x128xf32>
    %49 = arith.mulf %48, %47 : vector<16x128xf32>
    %cst_41 = arith.constant 2.000000e+01 : f32
    %50 = vector.broadcast %cst_41 : f32 to vector<16x128xf32>
    %51 = arith.mulf %45, %50 : vector<16x128xf32>
    %52 = arith.addf %49, %51 : vector<16x128xf32>
    %c0_42 = arith.constant 0 : index
    %c0_43 = arith.constant 0 : index
    %c0_44 = arith.constant 0 : index
    %53 = vector.load %arg8[%c0_42, %c0_43, %c0_44] : memref<1x16x128xf32, #tpu.memory_space<vmem>>, vector<1x16x128xf32>
    %54 = vector.shape_cast %53 : vector<1x16x128xf32> to vector<16x128xf32>
    %55 = vector.shape_cast %45 : vector<16x128xf32> to vector<1x16x128xf32>
    tpu.vector_store %arg8[%c0_42, %c0_43, %c0_44], %55 {strides = array<i32>} : memref<1x16x128xf32, #tpu.memory_space<vmem>>, vector<1x16x128xf32>,
    %c0_45 = arith.constant 0 : index
    %c0_46 = arith.constant 0 : index
    %c0_47 = arith.constant 0 : index
    %56 = vector.load %arg9[%c0_45, %c0_46, %c0_47] : memref<1x16x128xf32, #tpu.memory_space<vmem>>, vector<1x16x128xf32>
    %57 = vector.shape_cast %56 : vector<1x16x128xf32> to vector<16x128xf32>
    %58 = vector.shape_cast %52 : vector<16x128xf32> to vector<1x16x128xf32>
    tpu.vector_store %arg9[%c0_45, %c0_46, %c0_47], %58 {strides = array<i32>} : memref<1x16x128xf32, #tpu.memory_space<vmem>>, vector<1x16x128xf32>,
    %59 = arith.negf %52 : vector<16x128xf32>
    %60 = math.exp %59 : vector<16x128xf32>
    %cst_48 = arith.constant 1.000000e+00 : f32
    %61 = vector.broadcast %cst_48 : f32 to vector<16x128xf32>
    %62 = arith.addf %61, %60 : vector<16x128xf32>
    %63 = arith.divf %61, %62 : vector<16x128xf32>
    %c0_49 = arith.constant 0 : index
    %c0_50 = arith.constant 0 : index
    %c0_51 = arith.constant 0 : index
    %64 = vector.load %arg7[%c0_49, %c0_50, %c0_51] : memref<1x16x128xf32, #tpu.memory_space<vmem>>, vector<1x16x128xf32>
    %65 = vector.shape_cast %64 : vector<1x16x128xf32> to vector<16x128xf32>
    %66 = vector.shape_cast %63 : vector<16x128xf32> to vector<1x16x128xf32>
    tpu.vector_store %arg7[%c0_49, %c0_50, %c0_51], %66 {strides = array<i32>} : memref<1x16x128xf32, #tpu.memory_space<vmem>>, vector<1x16x128xf32>,
    %cst_52 = arith.constant 0.000000e+00 : f32
    %67 = vector.broadcast %cst_52 : f32 to vector<16x128xf32>
    %68 = arith.cmpf ogt, %52, %67 : vector<16x128xf32>
    %69 = arith.extui %68 : vector<16x128xi1> to vector<16x128xi32>
    %70 = arith.sitofp %69 : vector<16x128xi32> to vector<16x128xf32>
    %c0_53 = arith.constant 0 : index
    %c0_54 = arith.constant 0 : index
    %c0_55 = arith.constant 0 : index
    %71 = vector.load %arg6[%c0_53, %c0_54, %c0_55] : memref<1x16x128xf32, #tpu.memory_space<vmem>>, vector<1x16x128xf32>
    %72 = vector.shape_cast %71 : vector<1x16x128xf32> to vector<16x128xf32>
    %73 = vector.shape_cast %70 : vector<16x128xf32> to vector<1x16x128xf32>
    tpu.vector_store %arg6[%c0_53, %c0_54, %c0_55], %73 {strides = array<i32>} : memref<1x16x128xf32, #tpu.memory_space<vmem>>, vector<1x16x128xf32>,
    return
  }
  func.func @transform_0(%arg0: i32) -> (i32, i32, i32) {
    %c0_i32 = arith.constant 0 : i32
    %c0_i32_0 = arith.constant 0 : i32
    %c0_i32_1 = arith.constant 0 : i32
    return %arg0, %c0_i32, %c0_i32_0 : i32, i32, i32
  }
  func.func @transform_1(%arg0: i32) -> (i32, i32, i32) {
    %c0_i32 = arith.constant 0 : i32
    %c0_i32_0 = arith.constant 0 : i32
    %c0_i32_1 = arith.constant 0 : i32
    %c0_i32_2 = arith.constant 0 : i32
    return %c0_i32, %c0_i32_0, %c0_i32_1 : i32, i32, i32
  }
  func.func @transform_2(%arg0: i32) -> (i32, i32) {
    %c0_i32 = arith.constant 0 : i32
    %c0_i32_0 = arith.constant 0 : i32
    %c0_i32_1 = arith.constant 0 : i32
    return %c0_i32, %c0_i32_0 : i32, i32
  }
  func.func @transform_3(%arg0: i32) -> (i32, i32, i32) {
    %c0_i32 = arith.constant 0 : i32
    %c0_i32_0 = arith.constant 0 : i32
    %c0_i32_1 = arith.constant 0 : i32
    return %arg0, %c0_i32, %c0_i32_0 : i32, i32, i32
  }
  func.func @transform_4(%arg0: i32) -> (i32, i32, i32) {
    %c0_i32 = arith.constant 0 : i32
    %c0_i32_0 = arith.constant 0 : i32
    %c0_i32_1 = arith.constant 0 : i32
    return %arg0, %c0_i32, %c0_i32_0 : i32, i32, i32
  }
  func.func @transform_5(%arg0: i32) -> (i32, i32, i32) {
    %c0_i32 = arith.constant 0 : i32
    %c0_i32_0 = arith.constant 0 : i32
    %c0_i32_1 = arith.constant 0 : i32
    return %arg0, %c0_i32, %c0_i32_0 : i32, i32, i32
  }
  func.func @transform_6(%arg0: i32) -> (i32, i32, i32) {
    %c0_i32 = arith.constant 0 : i32
    %c0_i32_0 = arith.constant 0 : i32
    %c0_i32_1 = arith.constant 0 : i32
    return %arg0, %c0_i32, %c0_i32_0 : i32, i32, i32
  }
  func.func @transform_7(%arg0: i32) -> (i32, i32, i32) {
    %c0_i32 = arith.constant 0 : i32
    %c0_i32_0 = arith.constant 0 : i32
    %c0_i32_1 = arith.constant 0 : i32
    return %arg0, %c0_i32, %c0_i32_0 : i32, i32, i32
  }
  func.func @transform_8(%arg0: i32) -> (i32, i32, i32) {
    %c0_i32 = arith.constant 0 : i32
    %c0_i32_0 = arith.constant 0 : i32
    %c0_i32_1 = arith.constant 0 : i32
    return %arg0, %c0_i32, %c0_i32_0 : i32, i32, i32
  }
}

module attributes {stable_mosaic.version = 11 : i64} {
  func.func @_readout_kernel(%arg0: memref<2x2048xf32, #tpu.memory_space<vmem>>, %arg1: memref<2048x128xf32, #tpu.memory_space<vmem>>, %arg2: memref<1x128xf32, #tpu.memory_space<vmem>>, %arg3: memref<2x128xf32, #tpu.memory_space<vmem>>) attributes {dimension_semantics = [], scalar_prefetch = 0 : i64, scratch_operands = 0 : i64, tpu.core_type = #tpu.core_type<tc>} {
    %c0 = arith.constant 0 : index
    %c0_0 = arith.constant 0 : index
    %0 = vector.load %arg0[%c0, %c0_0] : memref<2x2048xf32, #tpu.memory_space<vmem>>, vector<2x2048xf32>
    %c0_1 = arith.constant 0 : index
    %c0_2 = arith.constant 0 : index
    %1 = vector.load %arg1[%c0_1, %c0_2] : memref<2048x128xf32, #tpu.memory_space<vmem>>, vector<2048x128xf32>
    %cst = arith.constant dense<0.000000e+00> : vector<2x128xf32>
    %2 = tpu.matmul %0, %1, %cst {dimension_numbers = #tpu.dot_dimension_numbers<[1], [0], [0], [1], [0, 0, 1, 1], [], []>} : vector<2x2048xf32>, vector<2048x128xf32>, vector<2x128xf32> -> vector<2x128xf32>
    %c0_3 = arith.constant 0 : index
    %c0_4 = arith.constant 0 : index
    %3 = vector.load %arg2[%c0_3, %c0_4] : memref<1x128xf32, #tpu.memory_space<vmem>>, vector<1x128xf32>
    %4 = vector.broadcast %3 : vector<1x128xf32> to vector<2x128xf32>
    %5 = arith.addf %2, %4 : vector<2x128xf32>
    %c0_5 = arith.constant 0 : index
    %c0_6 = arith.constant 0 : index
    %6 = vector.load %arg3[%c0_5, %c0_6] : memref<2x128xf32, #tpu.memory_space<vmem>>, vector<2x128xf32>
    tpu.vector_store %arg3[%c0_5, %c0_6], %5 {strides = array<i32>} : memref<2x128xf32, #tpu.memory_space<vmem>>, vector<2x128xf32>,
    return
  }
}

</mosaic_0001>

<bundles_post_ra>
// kernel: conv2d_dcll_forward.2
= control target key start
LH: loop header
LB: loop body
LE: loop exit
PB: predicated region body
PF: predicated region fallthrough
CT: control target
= control target key end

     0   :  { %s1359_s27 = smov 0   ;;  %s1535_s0 = inlined_call_operand.vmem [shape: f32[2,20,80], index: 0, kind: input, shape index: {}]   ;;  %s1536_s1 = inlined_call_operand.vmem [shape: bf16[5,80,128], index: 1, kind: input, shape index: {}]   ;;  %s1537_s2 = inlined_call_operand.vmem [shape: f32[1,128], index: 2, kind: input, shape index: {}]   ;;  %s1538_s3 = inlined_call_operand.vmem [shape: f32[2,16,128], index: 3, kind: input, shape index: {}, may-alias: {3,7}]   ;;  %s1539_s4 = inlined_call_operand.vmem [shape: f32[2,16,128], index: 4, kind: input, shape index: {}, may-alias: {4,8}]   ;;  %s1540_s5 = inlined_call_operand.vmem [shape: f32[2,16,128], index: 5, kind: output, shape index: {0}]   ;;  %s1541_s6 = inlined_call_operand.vmem [shape: f32[2,16,128], index: 6, kind: output, shape index: {1}]   ;;  %s1542_s7 = inlined_call_operand.vmem [shape: f32[2,16,128], index: 7, kind: output, shape index: {2}, may-alias: {3,7}]   ;;  %s1543_s8 = inlined_call_operand.vmem [shape: f32[2,16,128], index: 8, kind: output, shape index: {3}, may-alias: {4,8}]  }
   0x1 LB: > { %s1059_s28 = sadd.s32 4294967295, %s1310_s27   ;;  %p1063_p0 = scmp.ge.s32.totalorder %s1310_s27, 1  ;;  %s1310_s27 = sphi %s1359_s27, %s19_s27  }
   0x2   : > { %p289_p1 = scmp.lt.s32.totalorder %s1310_s27, 3 }
   0x4   : > { %p290_p2 = pnand %p1063_p0, %p289_p1 }
   0x5   : > { %v1271_v0 = vld [vmem:[%s1536_s1 + $0x28] sm:$0xff] (!%p290_p2)   ;;  %v1312_v1 = vmov (!%p290_p2), 0.0   ;;  %v1272_v2 = vld [vmem:[%s1536_s1] sm:$0xff] (!%p290_p2)   ;;  %v1273_v3 = vld [vmem:[%s1536_s1 + $0x30] sm:$0xff] (!%p290_p2)   ;;  %vm1313_vm0 = vmmov (!%p290_p2), 0   ;;  %p348_p3 = scmp.lt.s32.totalorder (!%p290_p2), %s1059_s28, 1 }
   0x6   : > { %293 = sbr.rel (%p290_p2) target bundleno = 319 (0x13f), region = 40  ;;  %1190 = vmatprep.subr.bf16.mxu0 (!%p290_p2), %v1312_v1  ;;  %1204 = vmatprep.subr.bf16.mxu1 (!%p290_p2), %v1312_v1  ;;  %v1274_v4 = vld [vmem:[%s1536_s1 + $0x8] sm:$0xff] (!%p290_p2)   ;;  %v1275_v5 = vld [vmem:[%s1536_s1 + $0x38] sm:$0xff] (!%p290_p2)   ;;  %v1276_v6 = vld [vmem:[%s1536_s1 + $0x10] sm:$0xff] (!%p290_p2)   ;;  %vm441_vm1 = vcmask (!%p290_p2), 654336  }
   0x7   : > { %1191 = vmatpush3.bf16.msra.mxu0 (!%p290_p2), %v1271_v0  ;;  %1200 = vmatprep.mubr.msk.bf16.mxu0 (!%p290_p2), %vm1313_vm0, %v1312_v1  ;;  %v1277_v7 = vld [vmem:[%s1536_s1 + $0x40] sm:$0xff] (!%p290_p2)   ;;  %v1278_v8 = vld [vmem:[%s1536_s1 + $0x18] sm:$0xff] (!%p290_p2)   ;;  %v1279_v9 = vld [vmem:[%s1536_s1 + $0x48] sm:$0xff] (!%p290_p2)  }
   0x8   : > { %1205 = vmatpush3.bf16.msra.mxu1 (!%p290_p2), %v1272_v2  ;;  %1192 = vmatprep.subr.bf16.mxu0 (!%p290_p2), %v1312_v1  ;;  %v1280_v11 = vld [vmem:[%s1536_s1 + $0x20] sm:$0xff] (!%p290_p2)   ;;  %v1281_v17 = vld [vmem:[%s1536_s1 + $0x50] sm:$0xff] (!%p290_p2)   ;;  %v1282_v18 = vld [vmem:[%s1536_s1 + $0x78] sm:$0xff] (!%p290_p2)  }
   0x9   : > { %1206 = vmatprep.subr.bf16.mxu1 (!%p290_p2), %v1312_v1  ;;  %1214 = vmatprep.mubr.msk.bf16.mxu1 (!%p290_p2), %vm1313_vm0, %v1312_v1  ;;  %v1283_v19 = vld [vmem:[%s1536_s1 + $0x58] sm:$0xff] (!%p290_p2)   ;;  %v1284_v20 = vld [vmem:[%s1536_s1 + $0x80] sm:$0xff] (!%p290_p2)   ;;  %v1286_v22 = vld [vmem:[%s1536_s1 + $0x88] sm:$0xff] (!%p290_p2)  }
   0xa   : > { %v1285_v21 = vld [vmem:[%s1536_s1 + $0x60] sm:$0xff] (!%p290_p2)   ;;  %v1287_v23 = vld [vmem:[%s1536_s1 + $0x68] sm:$0xff] (!%p290_p2)   ;;  %v1288_v24 = vld [vmem:[%s1536_s1 + $0x90] sm:$0xff] (!%p290_p2)  }
   0xb   : > { %1193 = vmatpush3.bf16.msra.mxu0 (!%p290_p2), %v1273_v3  ;;  %v1289_v25 = vld [vmem:[%s1536_s1 + $0x70] sm:$0xff] (!%p290_p2)   ;;  %v1290_v28 = vld [vmem:[%s1536_s1 + $0x98] sm:$0xff] (!%p290_p2)   ;;  %v1291_v32 = vld [vmem:[%s1536_s1 + $0xa0] sm:$0xff] (!%p290_p2)  }
   0xc   : > { %1207 = vmatpush3.bf16.msra.mxu1 (!%p290_p2), %v1274_v4  ;;  %1194 = vmatprep.subr.bf16.mxu0 (!%p290_p2), %v1312_v1  ;;  %v1292_v34 = vld [vmem:[%s1536_s1 + $0xa8] sm:$0xff] (!%p290_p2)   ;;  %v1293_v35 = vld [vmem:[%s1536_s1 + $0xb0] sm:$0xff] (!%p290_p2)   ;;  %v1294_v36 = vld [vmem:[%s1536_s1 + $0xb8] sm:$0xff] (!%p290_p2)  }
   0xd   : > { %s1545_s28 = smov (!%p348_p3, %s1059_s28), 1  ;;  %1208 = vmatprep.subr.bf16.mxu1 %v1312_v1  ;;  %v1295_v37 = vld [vmem:[%s1536_s1 + $0xc0] sm:$0xff]  }
   0xe   : > { %s1260_s17 = smul.u32 24, %s1545_s28  ;;  %v1147_v0 = vld [vmem:[%s1537_s2] ss:$0 sm:$0xff] }
   0xf   : > { %1195 = vmatpush3.bf16.msra.mxu0 %v1275_v5 }
  0x10   : > { %s1401_s22 = scalar_lea.vmem %s1535_s0, %s1260_s17  ;;  %1209 = vmatpush3.bf16.msra.mxu1 %v1276_v6  ;;  %1196 = vmatprep.subr.bf16.mxu0 %v1312_v1 }
  0x11   : > { %1210 = vmatprep.subr.bf16.mxu1 %v1312_v1  ;;  %v397_v10 = vld [vmem:[%s1401_s22 + $0x1] sm:$0xff]  ;;  %v398_v12 = vld [vmem:[%s1401_s22 + $0x9] sm:$0xff] }
  0x12   : > { %v384_v13 = vld [vmem:[%s1401_s22] sm:$0xff]  ;;  %v385_v14 = vld [vmem:[%s1401_s22 + $0x8] sm:$0xff]  ;;  %v399_v15 = vpack.c.bf16 %v398_v12, %v397_v10 }
  0x13   : > { %1197 = vmatpush3.bf16.msra.mxu0 %v1277_v7  ;;  %v386_v16 = vpack.c.bf16 %v385_v14, %v384_v13  ;;  %v560_v26 = vld [vmem:[%s1401_s22 + $0x2] sm:$0xff]  ;;  %v561_v27 = vld [vmem:[%s1401_s22 + $0xa] sm:$0xff] }
  0x14   : > { %1211 = vmatpush3.bf16.msra.mxu1 %v1278_v8  ;;  %1198 = vmatprep.subr.bf16.mxu0 %v1312_v1  ;;  %v650_v29 = vld [vmem:[%s1401_s22 + $0x3] sm:$0xff]  ;;  %v651_v30 = vld [vmem:[%s1401_s22 + $0xb] sm:$0xff]  ;;  %v562_v31 = vpack.c.bf16 %v561_v27, %v560_v26 }
  0x15   : > { %1212 = vmatprep.subr.bf16.mxu1 %v1312_v1  ;;  %v652_v33 = vpack.c.bf16 %v651_v30, %v650_v29  ;;  %v740_v38 = vld [vmem:[%s1401_s22 + $0x4] sm:$0xff]  ;;  %v741_v39 = vld [vmem:[%s1401_s22 + $0xc] sm:$0xff]  ;;  %s1501_s22 = sshll.u32 %s1545_s28, 4 }
  0x16   : > { %v742_v40 = vpack.c.bf16 %v741_v39, %v740_v38  ;;  %s357_s25 = scalar_lea.vmem %s1538_s3, %s1501_s22  ;;  %s362_s10 = scalar_lea.vmem %s1539_s4, %s1501_s22 }
  0x17   : > { %1199 = vmatpush3.bf16.msra.mxu0 %v1279_v9  ;;  %v841_v2 = vld [vmem:[%s357_s25] sm:$0xff]  ;;  %v842_v6 = vld [vmem:[%s357_s25 + $0x8] sm:$0xff]  ;;  %s377_s12 = scalar_lea.vmem %s1542_s7, %s1501_s22  ;;  %s382_s15 = scalar_lea.vmem %s1543_s8, %s1501_s22 }
  0x18   : > { %1213 = vmatpush3.bf16.msra.mxu1 %v1280_v11  ;;  %1218 = vmatprep.subr.bf16.mxu0 %v1312_v1  ;;  %v843_v8 = vmul.f32 0.9, %v841_v2  ;;  %v847_v11 = vld [vmem:[%s362_s10] sm:$0xff]  ;;  %v844_v14 = vmul.f32 0.9, %v842_v6  ;;  %s367_s18 = scalar_lea.vmem %s1540_s5, %s1501_s22  ;;  %s372_s21 = scalar_lea.vmem %s1541_s6, %s1501_s22 }
  0x19   : > { %1232 = vmatprep.subr.bf16.mxu1 %v1312_v1 }
  0x1a   : > { %1201 = vmatmul.mubr.msk.bf16.vlgmr.msra.gmra.mrb[0].mxu0 %vm441_vm1, %v399_v15  ;;  %v848_v15 = vld [vmem:[%s362_s10 + $0x8] sm:$0xff] }
  0x1b   : > { %1215 = vmatmul.mubr.msk.bf16.vlgmr.msra.gmra.mrb[0].mxu1 %vm441_vm1, %v386_v16  ;;  %1219 = vmatpush3.bf16.msra.mxu0 %v1281_v17  ;;  %v849_v17 = vmul.f32 0.95, %v847_v11 }
  0x1c   : > { %1233 = vmatpush3.bf16.msra.mxu1 %v1282_v18  ;;  %1220 = vmatprep.subr.bf16.mxu0 %v1312_v1 }
  0x1d   : > { %1234 = vmatprep.subr.bf16.mxu1 %v1312_v1  ;;  %1228 = vmatprep.mubr.msk.bf16.mxu0 %vm1313_vm0, %v1312_v1 }
  0x1e   : > { %1242 = vmatprep.mubr.msk.bf16.mxu1 %vm1313_vm0, %v1312_v1 }
  0x1f   : > { %1221 = vmatpush3.bf16.msra.mxu0 %v1283_v19 }
  0x20   : > { %1235 = vmatpush3.bf16.msra.mxu1 %v1284_v20  ;;  %1222 = vmatprep.subr.bf16.mxu0 %v1312_v1 }
  0x21   : > { %1236 = vmatprep.subr.bf16.mxu1 %v1312_v1 }
  0x23   : > { %1223 = vmatpush3.bf16.msra.mxu0 %v1285_v21  ;;  %v850_v21 = vmul.f32 0.95, %v848_v15 }
  0x24   : > { %1237 = vmatpush3.bf16.msra.mxu1 %v1286_v22  ;;  %1224 = vmatprep.subr.bf16.mxu0 %v1312_v1 }
  0x25   : > { %1238 = vmatprep.subr.bf16.mxu1 %v1312_v1 }
  0x27   : > { %1225 = vmatpush3.bf16.msra.mxu0 %v1287_v23 }
  0x28   : > { %1239 = vmatpush3.bf16.msra.mxu1 %v1288_v24  ;;  %1226 = vmatprep.subr.bf16.mxu0 %v1312_v1 }
  0x29   : > { %1240 = vmatprep.subr.bf16.mxu1 %v1312_v1 }
  0x2b   : > { %1227 = vmatpush3.bf16.msra.mxu0 %v1289_v25 }
  0x2c   : > { %1241 = vmatpush3.bf16.msra.mxu1 %v1290_v28  ;;  %1246 = vmatprep.subr.bf16.mxu0 %v1312_v1 }
  0x2e   : > { %1229 = vmatmul.mubr.msk.bf16.vlgmr.msra.gmra.mrb[4].mxu0 %vm441_vm1, %v562_v31 }
  0x2f   : > { %1247 = vmatpush3.bf16.msra.mxu0 %v1291_v32  ;;  %1243 = vmatmul.mubr.msk.bf16.vlgmr.msra.gmra.mrb[4].mxu1 %vm441_vm1, %v652_v33 }
  0x30   : > { %1248 = vmatprep.subr.bf16.mxu0 %v1312_v1  ;;  %1256 = vmatprep.mubr.msk.bf16.mxu0 %vm1313_vm0, %v1312_v1 }
  0x33   : > { %1249 = vmatpush3.bf16.msra.mxu0 %v1292_v34 }
  0x34   : > { %1250 = vmatprep.subr.bf16.mxu0 %v1312_v1 }
  0x37   : > { %1251 = vmatpush3.bf16.msra.mxu0 %v1293_v35 }
  0x38   : > { %1252 = vmatprep.subr.bf16.mxu0 %v1312_v1 }
  0x3b   : > { %1253 = vmatpush3.bf16.msra.mxu0 %v1294_v36 }
  0x3c   : > { %1254 = vmatprep.subr.bf16.mxu0 %v1312_v1 }
  0x3f   : > { %1255 = vmatpush3.bf16.msra.mxu0 %v1295_v37 }
  0x42   : > { %1257 = vmatmul.mubr.msk.bf16.vlgmr.msra.gmra.mrb[8].mxu0 %vm441_vm1, %v742_v40 }
  0xed   : > { %v479_v41 = vpop.f32.mrb[0].mxu0 }
  0xee   : > { %v553_v42 = vpop.f32.mrb[0].mxu1  ;;  %v1202_v43 = vpop.f32.mrb[1].mxu0 }
  0xef   : > { %v554_v44 = vadd.f32 %v553_v42, %v479_v41  ;;  %v1216_v45 = vpop.f32.mrb[1].mxu1  ;;  %v482_v46 = vpop.f32.mrb[2].mxu0 }
  0xf0   : > { %v556_v47 = vpop.f32.mrb[2].mxu1  ;;  %v1203_v48 = vpop.f32.mrb[3].mxu0 }
  0xf1   : > { %v557_v49 = vadd.f32 %v556_v47, %v482_v46  ;;  %v1217_v50 = vpop.f32.mrb[3].mxu1 }
 0x101   : > { %v641_v51 = vpop.f32.mrb[4].mxu0 }
 0x102   : > { %v648_v52 = vadd.f32 %v641_v51, %v554_v44  ;;  %v1230_v53 = vpop.f32.mrb[5].mxu0  ;;  %v731_v54 = vpop.f32.mrb[4].mxu1 }
 0x103   : > { %v644_v55 = vpop.f32.mrb[6].mxu0  ;;  %v1244_v56 = vpop.f32.mrb[5].mxu1 }
 0x104   : > { %v649_v57 = vadd.f32 %v644_v55, %v557_v49  ;;  %v738_v58 = vadd.f32 %v731_v54, %v648_v52  ;;  %v1231_v59 = vpop.f32.mrb[7].mxu0  ;;  %v734_v60 = vpop.f32.mrb[6].mxu1 }
 0x105   : > { %v1245_v61 = vpop.f32.mrb[7].mxu1 }
 0x106   : > { %v739_v62 = vadd.f32 %v734_v60, %v649_v57 }
 0x115   : > { %v821_v63 = vpop.f32.mrb[8].mxu0 }
 0x116   : > { %v828_v3 = vadd.f32 %v821_v63, %v738_v58  ;;  %v1258_v4 = vpop.f32.mrb[9].mxu0 }
 0x117   : > { %v824_v5 = vpop.f32.mrb[10].mxu0 }
 0x118   : > { %v837_v7 = vadd.f32 %v1147_v0, %v828_v3  ;;  %v829_v9 = vadd.f32 %v824_v5, %v739_v62  ;;  %v1259_v10 = vpop.f32.mrb[11].mxu0 }
 0x11a   : > { %v839_v12 = vmul.f32 10.0, %v837_v7  ;;  %v838_v13 = vadd.f32 %v1147_v0, %v829_v9 }
 0x11c   : > { %v845_v16 = vadd.f32 %v843_v8, %v839_v12  ;;  %v840_v18 = vmul.f32 10.0, %v838_v13 }
 0x11e   : > { %v851_v19 = vmul.f32 20.0, %v845_v16  ;;  %v846_v20 = vadd.f32 %v844_v14, %v840_v18  ;;  %855 = vst [vmem:[%s377_s12] sm:$0xff] %v845_v16 }
 0x120   : > { %v853_v22 = vadd.f32 %v851_v19, %v849_v17  ;;  %v852_v23 = vmul.f32 20.0, %v846_v20  ;;  %856 = vst [vmem:[%s377_s12 + $0x8] sm:$0xff] %v846_v20 }
 0x122   : > { %v1148_v24 = vmul.f32 -1.442695, %v853_v22  ;;  %vm873_vm2 = vcmp.gt.f32.partialorder %v853_v22, 0.0  ;;  %v854_v25 = vadd.f32 %v852_v23, %v850_v21  ;;  %857 = vst [vmem:[%s382_s15] sm:$0xff] %v853_v22 }
 0x123   : > { %v1150_v26 = vsel %vm873_vm2, 1.0, %v1312_v1 }
 0x124   : > { %1296 = vpow2.f32 %v1148_v24  ;;  %879 = vst [vmem:[%s367_s18] sm:$0xff] %v1150_v26  ;;  %858 = vst [vmem:[%s382_s15 + $0x8] sm:$0xff] %v854_v25  ;;  %v1149_v27 = vmul.f32 -1.442695, %v854_v25  ;;  %vm874_vm3 = vcmp.gt.f32.partialorder %v854_v25, 0.0 }
 0x125   : > { %v1151_v28 = vsel %vm874_vm3, 1.0, %v1312_v1 }
 0x126   : > { %1298 = vpow2.f32 %v1149_v27  ;;  %880 = vst [vmem:[%s367_s18 + $0x8] sm:$0xff] %v1151_v28 }
 0x12e   : > { %v1297_v29 = vpop.eup %1296 }
 0x12f   : > { %v865_v30 = vadd.f32 1.0, %v1297_v29 }
 0x130   : > { %v1299_v31 = vpop.eup %1298 }
 0x131   : > { %1300 = vrcp.f32 %v865_v30  ;;  %v866_v32 = vadd.f32 1.0, %v1299_v31 }
 0x133   : > { %1302 = vrcp.f32 %v866_v32 }
 0x13b   : > { %v1301_v33 = vpop.eup %1300 }
 0x13c   : > { %871 = vst [vmem:[%s372_s21] sm:$0xff] %v1301_v33 }
 0x13d   : > { %v1303_v34 = vpop.eup %1302 }
 0x13e   : > { %872 = vst [vmem:[%s372_s21 + $0x8] sm:$0xff] %v1303_v34 }
 0x13f PF: > { %s19_s27 = sadd.s32 1, %s1310_s27  }
 0x140   : > { %p16_p4 = scmp.ge.s32.totalorder %s19_s27, 4  }
 0x142   :  { %18 = sbr.rel (!%p16_p4) target bundleno = 1 (0x1), region = 116 }

// kernel: conv2d_dcll_forward.3
= control target key start
LH: loop header
LB: loop body
LE: loop exit
PB: predicated region body
PF: predicated region fallthrough
CT: control target
= control target key end

     0   :  { %8 = vsyncpa [#allocation3], 0  ;;  %s1658_s0 = inlined_call_operand.vmem [shape: f32[2,2048], index: 0, kind: input, shape index: {}]   ;;  %s1659_s1 = inlined_call_operand.hbm [shape: f32[2048,128], index: 1, kind: input, shape index: {}]   ;;  %s1660_s2 = inlined_call_operand.vmem [shape: f32[1,128], index: 2, kind: input, shape index: {}]   ;;  %s1661_s3 = inlined_call_operand.hbm [shape: f32[2,128], index: 3, kind: output, shape index: {}]  }
   0x1   :  { %9 = vsyncpa [#allocation4], 0  ;;  %s1554_s12 = smov [#allocation2]   ;;  %s1506_s16 = scalar_lea.hbm %s1659_s1, 32768 }
   0x2   :  { %s17_s13 = sshll.u32 %s1554_s12, 4  ;;  %p1507_p0 = scmp.ne.s32.totalorder %s1659_s1, %s1506_s16  ;;  %s18_s13 = int_to_ptr.vmem [resolvable:$true] %s17_s13 }
   0x3   :  { %p1510_p1 = scmp.lt.u32.totalorder %s1506_s16, %s1659_s1 }
   0x5   :  { %p1512_p2 = pnand %p1510_p1, %p1507_p0 }
   0x7   :  { %1515 = shalt.err (!%p1512_p2)
}
   0x8   :  { %s1516_s21 = scalar_lea.vmem %s18_s13, 32768  ;;  %p1521_p4 = scmp.lt.s32.totalorder %s18_s13, %s18_s13 }
   0x9   :  { %p1517_p3 = scmp.ne.s32.totalorder %s18_s13, %s1516_s21  ;;  %p1522_p5 = scmp.lt.s32.totalorder %s1516_s21, %s1516_s21 }
   0xb   :  { %p1523_p6 = por %p1522_p5, %p1521_p4 }
   0xd   :  { %p1524_p7 = pnand %p1523_p6, %p1517_p3 }
   0xf   :  { %1527 = shalt.err (!%p1524_p7)
}
  0x10   :  { %s1555_s22 = smov 128   ;;  %s1556_s23 = smov 8  }
  0x11   :  { %23 = dma.hbm_to_vmem [thread:$0]  %s1659_s1, 32768, %s18_s13, [#allocation3], %s1555_s22, %s1555_s22, %s1556_s23  }
  0x12   :  { %1550 = dma.done.wait [#allocation3], 32768  }
  0x13   :  { %1551 = vsyncadd [#allocation3], 4294934528  ;;  %v49_v0 = vld [vmem:[#allocation2 + $0x80] sm:$0xff]  ;;  %v50_v1 = vld [vmem:[#allocation2 + $0x88] sm:$0xff]  ;;  %v1557_v47 = vmov 1983009808   ;;  %v304_v49 = vlaneseq }
  0x14   :  { %v33_v2 = vld [vmem:[#allocation2] sm:$0xff]  ;;  %v1241_v3 = vpack.c.bf16 %v50_v1, %v49_v0  ;;  %v34_v4 = vld [vmem:[#allocation2 + $0x8] sm:$0xff]  ;;  %v51_v11 = vld [vmem:[#allocation2 + $0x90] sm:$0xff]  ;;  %v302_v48 = vunpack.c.l.s4 %v1557_v47 }
  0x15   :  { %v81_v5 = vld [vmem:[#allocation2 + $0x180] sm:$0xff]  ;;  %v82_v6 = vld [vmem:[#allocation2 + $0x188] sm:$0xff]  ;;  %v1243_v7 = vpack.c.bf16 %v34_v4, %v33_v2  ;;  %v52_v13 = vld [vmem:[#allocation2 + $0x98] sm:$0xff]  ;;  %v305_v0 = vshrl.u32 %v304_v49, 7 }
  0x16   :  { %v1273_v8 = vpack.c.bf16 %v82_v6, %v81_v5  ;;  %v65_v9 = vld [vmem:[#allocation2 + $0x100] sm:$0xff]  ;;  %v66_v10 = vld [vmem:[#allocation2 + $0x108] sm:$0xff]  ;;  %1242 = vmatprep.subr.bf16.mxu0 %v1241_v3  ;;  %v35_v14 = vld [vmem:[#allocation2 + $0x10] sm:$0xff]  ;;  %v1245_v16 = vpack.c.bf16 %v52_v13, %v51_v11  ;;  %v303_v63 = vunpack.c.0.s8 %v302_v48 }
  0x17   :  { %v1275_v12 = vpack.c.bf16 %v66_v10, %v65_v9  ;;  %v36_v15 = vld [vmem:[#allocation2 + $0x18] sm:$0xff]  ;;  %1244 = vmatpush3.bf16.msra.mxu0 %v1243_v7  ;;  %v83_v18 = vld [vmem:[#allocation2 + $0x190] sm:$0xff]  ;;  %v53_v23 = vld [vmem:[#allocation2 + $0xa0] sm:$0xff] }
  0x18   :  { %1274 = vmatprep.subr.bf16.mxu1 %v1273_v8  ;;  %v1247_v17 = vpack.c.bf16 %v36_v15, %v35_v14  ;;  %v84_v19 = vld [vmem:[#allocation2 + $0x198] sm:$0xff]  ;;  %v67_v20 = vld [vmem:[#allocation2 + $0x110] sm:$0xff]  ;;  %v54_v24 = vld [vmem:[#allocation2 + $0xa8] sm:$0xff]  ;;  %1246 = vmatprep.subr.bf16.mxu0 %v1245_v16  ;;  %v1591_v13 = vsub.s32 %v303_v63, %v305_v0 }
  0x19   :  { %1276 = vmatpush3.bf16.msra.mxu1 %v1275_v12  ;;  %v1277_v21 = vpack.c.bf16 %v84_v19, %v83_v18  ;;  %v68_v22 = vld [vmem:[#allocation2 + $0x118] sm:$0xff]  ;;  %v1249_v26 = vpack.c.bf16 %v54_v24, %v53_v23  ;;  %v37_v27 = vld [vmem:[#allocation2 + $0x20] sm:$0xff]  ;;  %v38_v28 = vld [vmem:[#allocation2 + $0x28] sm:$0xff] }
  0x1a   :  { %v1279_v25 = vpack.c.bf16 %v68_v22, %v67_v20  ;;  %v85_v29 = vld [vmem:[#allocation2 + $0x1a0] sm:$0xff]  ;;  %v86_v30 = vld [vmem:[#allocation2 + $0x1a8] sm:$0xff]  ;;  %v1251_v33 = vpack.c.bf16 %v38_v28, %v37_v27  ;;  %v55_v35 = vld [vmem:[#allocation2 + $0xb0] sm:$0xff] }
  0x1b   :  { %1278 = vmatprep.subr.bf16.mxu1 %v1277_v21  ;;  %v69_v31 = vld [vmem:[#allocation2 + $0x120] sm:$0xff]  ;;  %v70_v32 = vld [vmem:[#allocation2 + $0x128] sm:$0xff]  ;;  %1248 = vmatpush3.bf16.msra.mxu0 %v1247_v17  ;;  %v1281_v34 = vpack.c.bf16 %v86_v30, %v85_v29  ;;  %v56_v36 = vld [vmem:[#allocation2 + $0xb8] sm:$0xff] }
  0x1c   :  { %v39_v37 = vld [vmem:[#allocation2 + $0x30] sm:$0xff]  ;;  %1250 = vmatprep.subr.bf16.mxu0 %v1249_v26  ;;  %v1283_v38 = vpack.c.bf16 %v70_v32, %v69_v31  ;;  %v1253_v39 = vpack.c.bf16 %v56_v36, %v55_v35  ;;  %v40_v40 = vld [vmem:[#allocation2 + $0x38] sm:$0xff]  ;;  %v57_v46 = vld [vmem:[#allocation2 + $0xc0] sm:$0xff] }
  0x1d   :  { %1280 = vmatpush3.bf16.msra.mxu1 %v1279_v25  ;;  %v87_v41 = vld [vmem:[#allocation2 + $0x1b0] sm:$0xff]  ;;  %v88_v42 = vld [vmem:[#allocation2 + $0x1b8] sm:$0xff]  ;;  %v58_v50 = vld [vmem:[#allocation2 + $0xc8] sm:$0xff]  ;;  %v1255_v51 = vpack.c.bf16 %v40_v40, %v39_v37 }
  0x1e   :  { %1282 = vmatprep.subr.bf16.mxu1 %v1281_v34  ;;  %v1285_v43 = vpack.c.bf16 %v88_v42, %v87_v41  ;;  %v71_v44 = vld [vmem:[#allocation2 + $0x130] sm:$0xff]  ;;  %v72_v45 = vld [vmem:[#allocation2 + $0x138] sm:$0xff]  ;;  %v89_v52 = vld [vmem:[#allocation2 + $0x1c0] sm:$0xff]  ;;  %v1257_v55 = vpack.c.bf16 %v58_v50, %v57_v46 }
  0x1f   :  { %1252 = vmatpush3.bf16.msra.mxu0 %v1251_v33  ;;  %v90_v53 = vld [vmem:[#allocation2 + $0x1c8] sm:$0xff]  ;;  %v1287_v54 = vpack.c.bf16 %v72_v45, %v71_v44  ;;  %v41_v56 = vld [vmem:[#allocation2 + $0x40] sm:$0xff]  ;;  %v59_v61 = vld [vmem:[#allocation2 + $0xd0] sm:$0xff] }
  0x20   :  { %1254 = vmatprep.subr.bf16.mxu0 %v1253_v39  ;;  %v42_v57 = vld [vmem:[#allocation2 + $0x48] sm:$0xff]  ;;  %v73_v58 = vld [vmem:[#allocation2 + $0x140] sm:$0xff]  ;;  %v1289_v59 = vpack.c.bf16 %v90_v53, %v89_v52  ;;  %v60_v62 = vld [vmem:[#allocation2 + $0xd8] sm:$0xff] }
  0x21   :  { %1284 = vmatpush3.bf16.msra.mxu1 %v1283_v38  ;;  %v74_v60 = vld [vmem:[#allocation2 + $0x148] sm:$0xff]  ;;  %v91_v1 = vld [vmem:[#allocation2 + $0x1d0] sm:$0xff]  ;;  %v92_v2 = vld [vmem:[#allocation2 + $0x1d8] sm:$0xff]  ;;  %v1259_v3 = vpack.c.bf16 %v42_v57, %v41_v56  ;;  %v1261_v5 = vpack.c.bf16 %v60_v62, %v59_v61 }
  0x22   :  { %1286 = vmatprep.subr.bf16.mxu1 %v1285_v43  ;;  %v1291_v4 = vpack.c.bf16 %v74_v60, %v73_v58  ;;  %v43_v6 = vld [vmem:[#allocation2 + $0x50] sm:$0xff]  ;;  %v44_v7 = vld [vmem:[#allocation2 + $0x58] sm:$0xff]  ;;  %v1293_v9 = vpack.c.bf16 %v92_v2, %v91_v1  ;;  %v61_v11 = vld [vmem:[#allocation2 + $0xe0] sm:$0xff] }
  0x23   :  { %1256 = vmatpush3.bf16.msra.mxu0 %v1255_v51  ;;  %v75_v8 = vld [vmem:[#allocation2 + $0x150] sm:$0xff]  ;;  %v76_v10 = vld [vmem:[#allocation2 + $0x158] sm:$0xff]  ;;  %v62_v12 = vld [vmem:[#allocation2 + $0xe8] sm:$0xff]  ;;  %v1263_v16 = vpack.c.bf16 %v44_v7, %v43_v6 }
  0x24   :  { %1258 = vmatprep.subr.bf16.mxu0 %v1257_v55  ;;  %v93_v14 = vld [vmem:[#allocation2 + $0x1e0] sm:$0xff]  ;;  %v94_v15 = vld [vmem:[#allocation2 + $0x1e8] sm:$0xff]  ;;  %v1295_v18 = vpack.c.bf16 %v76_v10, %v75_v8  ;;  %v1265_v19 = vpack.c.bf16 %v62_v12, %v61_v11  ;;  %v63_v25 = vld [vmem:[#allocation2 + $0xf0] sm:$0xff] }
  0x25   :  { %1288 = vmatpush3.bf16.msra.mxu1 %v1287_v54  ;;  %v45_v17 = vld [vmem:[#allocation2 + $0x60] sm:$0xff]  ;;  %v46_v20 = vld [vmem:[#allocation2 + $0x68] sm:$0xff]  ;;  %v1297_v23 = vpack.c.bf16 %v94_v15, %v93_v14  ;;  %v64_v26 = vld [vmem:[#allocation2 + $0xf8] sm:$0xff] }
  0x26   :  { %1290 = vmatprep.subr.bf16.mxu1 %v1289_v59  ;;  %v77_v21 = vld [vmem:[#allocation2 + $0x160] sm:$0xff]  ;;  %v78_v24 = vld [vmem:[#allocation2 + $0x168] sm:$0xff]  ;;  %v95_v29 = vld [vmem:[#allocation2 + $0x1f0] sm:$0xff]  ;;  %v1267_v31 = vpack.c.bf16 %v46_v20, %v45_v17  ;;  %v1269_v35 = vpack.c.bf16 %v64_v26, %v63_v25 }
  0x27   :  { %1260 = vmatpush3.bf16.msra.mxu0 %v1259_v3  ;;  %v29_v22 = vld [vmem:[%s1658_s0] sm:$0xff]  ;;  %v96_v30 = vld [vmem:[#allocation2 + $0x1f8] sm:$0xff]  ;;  %v1299_v34 = vpack.c.bf16 %v78_v24, %v77_v21  ;;  %v47_v36 = vld [vmem:[#allocation2 + $0x70] sm:$0xff] }
  0x28   :  { %1262 = vmatprep.subr.bf16.mxu0 %v1261_v5  ;;  %v307_v27 = vrot.slane %v29_v22, %v1591_v13  ;;  %v300_v28 = vcombine.high %v29_v22, %v29_v22  ;;  %v48_v37 = vld [vmem:[#allocation2 + $0x78] sm:$0xff]  ;;  %v79_v38 = vld [vmem:[#allocation2 + $0x170] sm:$0xff]  ;;  %v1301_v39 = vpack.c.bf16 %v96_v30, %v95_v29  ;;  %v113_v41 = vld [vmem:[#allocation2 + $0x280] sm:$0xff] }
  0x29   :  { %1292 = vmatpush3.bf16.msra.mxu1 %v1291_v4  ;;  %v80_v40 = vld [vmem:[#allocation2 + $0x178] sm:$0xff]  ;;  %v114_v42 = vld [vmem:[#allocation2 + $0x288] sm:$0xff]  ;;  %v145_v44 = vld [vmem:[#allocation2 + $0x380] sm:$0xff]  ;;  %v1271_v46 = vpack.c.bf16 %v48_v37, %v47_v36 }
  0x2a   :  { %1294 = vmatprep.subr.bf16.mxu1 %v1293_v9  ;;  %v315_v32 = vcombine.high %v307_v27, %v307_v27  ;;  %v314_v33 = vrot.slane %v300_v28, %v1591_v13  ;;  %v146_v45 = vld [vmem:[#allocation2 + $0x388] sm:$0xff]  ;;  %v1303_v47 = vpack.c.bf16 %v80_v40, %v79_v38  ;;  %v1305_v48 = vpack.c.bf16 %v114_v42, %v113_v41  ;;  %v97_v49 = vld [vmem:[#allocation2 + $0x200] sm:$0xff]  ;;  %v115_v54 = vld [vmem:[#allocation2 + $0x290] sm:$0xff] }
  0x2b   :  { %1264 = vmatpush3.bf16.msra.mxu0 %v1263_v16  ;;  %v98_v50 = vld [vmem:[#allocation2 + $0x208] sm:$0xff]  ;;  %v129_v51 = vld [vmem:[#allocation2 + $0x300] sm:$0xff]  ;;  %v1337_v52 = vpack.c.bf16 %v146_v45, %v145_v44  ;;  %v116_v55 = vld [vmem:[#allocation2 + $0x298] sm:$0xff] }
  0x2c   :  { %1266 = vmatprep.subr.bf16.mxu0 %v1265_v19  ;;  %448 = vmatprep.mubr.f32.mxu0 %v315_v32  ;;  %v316_v43 = vcombine.high %v314_v33, %v314_v33  ;;  %v130_v53 = vld [vmem:[#allocation2 + $0x308] sm:$0xff]  ;;  %v147_v56 = vld [vmem:[#allocation2 + $0x390] sm:$0xff]  ;;  %v148_v57 = vld [vmem:[#allocation2 + $0x398] sm:$0xff]  ;;  %v1307_v58 = vpack.c.bf16 %v98_v50, %v97_v49  ;;  %v1309_v60 = vpack.c.bf16 %v116_v55, %v115_v54 }
  0x2d   :  { %1296 = vmatpush3.bf16.msra.mxu1 %v1295_v18  ;;  %v1339_v59 = vpack.c.bf16 %v130_v53, %v129_v51  ;;  %v99_v61 = vld [vmem:[#allocation2 + $0x210] sm:$0xff]  ;;  %v100_v62 = vld [vmem:[#allocation2 + $0x218] sm:$0xff]  ;;  %v1341_v0 = vpack.c.bf16 %v148_v57, %v147_v56  ;;  %v117_v2 = vld [vmem:[#allocation2 + $0x2a0] sm:$0xff] }
  0x2e   :  { %1298 = vmatprep.subr.bf16.mxu1 %v1297_v23  ;;  %518 = vmatprep.mubr.f32.mxu1 %v316_v43  ;;  %v131_v63 = vld [vmem:[#allocation2 + $0x310] sm:$0xff]  ;;  %v132_v1 = vld [vmem:[#allocation2 + $0x318] sm:$0xff]  ;;  %v118_v3 = vld [vmem:[#allocation2 + $0x2a8] sm:$0xff]  ;;  %v1311_v6 = vpack.c.bf16 %v100_v62, %v99_v61 }
  0x2f   :  { %1268 = vmatpush3.bf16.msra.mxu0 %v1267_v31  ;;  %v149_v4 = vld [vmem:[#allocation2 + $0x3a0] sm:$0xff]  ;;  %v150_v5 = vld [vmem:[#allocation2 + $0x3a8] sm:$0xff]  ;;  %v1343_v7 = vpack.c.bf16 %v132_v1, %v131_v63  ;;  %v1313_v8 = vpack.c.bf16 %v118_v3, %v117_v2  ;;  %v119_v15 = vld [vmem:[#allocation2 + $0x2b0] sm:$0xff] }
  0x30   :  { %1270 = vmatprep.subr.bf16.mxu0 %v1269_v35  ;;  %v101_v9 = vld [vmem:[#allocation2 + $0x220] sm:$0xff]  ;;  %v102_v10 = vld [vmem:[#allocation2 + $0x228] sm:$0xff]  ;;  %v1345_v12 = vpack.c.bf16 %v150_v5, %v149_v4  ;;  %v120_v16 = vld [vmem:[#allocation2 + $0x2b8] sm:$0xff] }
  0x31   :  { %1300 = vmatpush3.bf16.msra.mxu1 %v1299_v34  ;;  %v133_v11 = vld [vmem:[#allocation2 + $0x320] sm:$0xff]  ;;  %v134_v14 = vld [vmem:[#allocation2 + $0x328] sm:$0xff]  ;;  %v151_v17 = vld [vmem:[#allocation2 + $0x3b0] sm:$0xff]  ;;  %v1315_v19 = vpack.c.bf16 %v102_v10, %v101_v9  ;;  %v1317_v21 = vpack.c.bf16 %v120_v16, %v119_v15 }
  0x32   :  { %1302 = vmatprep.subr.bf16.mxu1 %v1301_v39  ;;  %v152_v18 = vld [vmem:[#allocation2 + $0x3b8] sm:$0xff]  ;;  %v1347_v20 = vpack.c.bf16 %v134_v14, %v133_v11  ;;  %v103_v22 = vld [vmem:[#allocation2 + $0x230] sm:$0xff]  ;;  %v122_v28 = vld [vmem:[#allocation2 + $0x2c8] sm:$0xff] }
  0x33   :  { %1272 = vmatpush3.bf16.msra.mxu0 %v1271_v46  ;;  %v104_v23 = vld [vmem:[#allocation2 + $0x238] sm:$0xff]  ;;  %v135_v24 = vld [vmem:[#allocation2 + $0x330] sm:$0xff]  ;;  %v1349_v25 = vpack.c.bf16 %v152_v18, %v151_v17  ;;  %v153_v29 = vld [vmem:[#allocation2 + $0x3c0] sm:$0xff] }
  0x34   :  { %1306 = vmatprep.subr.bf16.mxu0 %v1305_v48  ;;  %v136_v26 = vld [vmem:[#allocation2 + $0x338] sm:$0xff]  ;;  %v154_v30 = vld [vmem:[#allocation2 + $0x3c8] sm:$0xff]  ;;  %v1319_v32 = vpack.c.bf16 %v104_v23, %v103_v22  ;;  %v105_v37 = vld [vmem:[#allocation2 + $0x240] sm:$0xff] }
  0x35   :  { %1304 = vmatpush3.bf16.msra.mxu1 %v1303_v47  ;;  %v30_v31 = vld [vmem:[%s1658_s0 + $0x8] sm:$0xff]  ;;  %v1351_v35 = vpack.c.bf16 %v136_v26, %v135_v24  ;;  %v137_v39 = vld [vmem:[#allocation2 + $0x340] sm:$0xff]  ;;  %v1353_v40 = vpack.c.bf16 %v154_v30, %v153_v29  ;;  %v123_v42 = vld [vmem:[#allocation2 + $0x2d0] sm:$0xff] }
  0x36   :  { %1338 = vmatprep.subr.bf16.mxu1 %v1337_v52  ;;  %449 = vmatmul.mubr.f32.vlgmr.msra.gmra.mrb[0].mxu0 %v307_v27  ;;  %v121_v27 = vld [vmem:[#allocation2 + $0x2c0] sm:$0xff]  ;;  %v317_v34 = vcombine.high %v30_v31, %v30_v31  ;;  %v106_v38 = vld [vmem:[#allocation2 + $0x248] sm:$0xff]  ;;  %v124_v43 = vld [vmem:[#allocation2 + $0x2d8] sm:$0xff] }
  0x37   :  { %1308 = vmatpush3.bf16.msra.mxu0 %v1307_v58  ;;  %v1321_v36 = vpack.c.bf16 %v122_v28, %v121_v27  ;;  %v138_v41 = vld [vmem:[#allocation2 + $0x348] sm:$0xff]  ;;  %v155_v46 = vld [vmem:[#allocation2 + $0x3d0] sm:$0xff]  ;;  %v156_v47 = vld [vmem:[#allocation2 + $0x3d8] sm:$0xff]  ;;  %v1323_v48 = vpack.c.bf16 %v106_v38, %v105_v37  ;;  %v1325_v51 = vpack.c.bf16 %v124_v43, %v123_v42 }
  0x38   :  { %519 = vmatmul.mubr.f32.vlgmr.msra.gmra.mrb[0].mxu1 %v314_v33  ;;  %1310 = vmatprep.subr.bf16.mxu0 %v1309_v60  ;;  %v1602_v33 = vrot.slane %v30_v31, %v1591_v13  ;;  %v1607_v45 = vrot.slane %v317_v34, %v1591_v13  ;;  %v1355_v50 = vpack.c.bf16 %v138_v41, %v137_v39  ;;  %v107_v52 = vld [vmem:[#allocation2 + $0x250] sm:$0xff]  ;;  %v108_v53 = vld [vmem:[#allocation2 + $0x258] sm:$0xff]  ;;  %v125_v57 = vld [vmem:[#allocation2 + $0x2e0] sm:$0xff] }
  0x39   :  { %1340 = vmatpush3.bf16.msra.mxu1 %v1339_v59  ;;  %v139_v54 = vld [vmem:[#allocation2 + $0x350] sm:$0xff]  ;;  %v1357_v55 = vpack.c.bf16 %v156_v47, %v155_v46  ;;  %v140_v56 = vld [vmem:[#allocation2 + $0x358] sm:$0xff]  ;;  %v126_v58 = vld [vmem:[#allocation2 + $0x2e8] sm:$0xff]  ;;  %v1327_v61 = vpack.c.bf16 %v108_v53, %v107_v52 }
  0x3a   :  { %1342 = vmatprep.subr.bf16.mxu1 %v1341_v0  ;;  %v332_v44 = vcombine.high %v1602_v33, %v1602_v33  ;;  %v333_v49 = vcombine.high %v1607_v45, %v1607_v45  ;;  %v157_v59 = vld [vmem:[#allocation2 + $0x3e0] sm:$0xff]  ;;  %v158_v60 = vld [vmem:[#allocation2 + $0x3e8] sm:$0xff]  ;;  %v1359_v62 = vpack.c.bf16 %v140_v56, %v139_v54  ;;  %v1329_v63 = vpack.c.bf16 %v126_v58, %v125_v57  ;;  %v127_v5 = vld [vmem:[#allocation2 + $0x2f0] sm:$0xff] }
  0x3b   :  { %1312 = vmatpush3.bf16.msra.mxu0 %v1311_v6  ;;  %v109_v0 = vld [vmem:[#allocation2 + $0x260] sm:$0xff]  ;;  %v110_v1 = vld [vmem:[#allocation2 + $0x268] sm:$0xff]  ;;  %v1361_v3 = vpack.c.bf16 %v158_v60, %v157_v59  ;;  %v128_v6 = vld [vmem:[#allocation2 + $0x2f8] sm:$0xff] }
  0x3c   :  { %1314 = vmatprep.subr.bf16.mxu0 %v1313_v8  ;;  %588 = vmatprep.mubr.f32.mxu0 %v332_v44  ;;  %v141_v2 = vld [vmem:[#allocation2 + $0x360] sm:$0xff]  ;;  %v142_v4 = vld [vmem:[#allocation2 + $0x368] sm:$0xff]  ;;  %v160_v8 = vld [vmem:[#allocation2 + $0x3f8] sm:$0xff]  ;;  %v1331_v9 = vpack.c.bf16 %v110_v1, %v109_v0  ;;  %v1333_v11 = vpack.c.bf16 %v128_v6, %v127_v5 }
  0x3d   :  { %1344 = vmatpush3.bf16.msra.mxu1 %v1343_v7  ;;  %658 = vmatprep.mubr.f32.mxu1 %v333_v49  ;;  %v159_v7 = vld [vmem:[#allocation2 + $0x3f0] sm:$0xff]  ;;  %v1363_v10 = vpack.c.bf16 %v142_v4, %v141_v2  ;;  %v112_v14 = vld [vmem:[#allocation2 + $0x278] sm:$0xff]  ;;  %v177_v18 = vld [vmem:[#allocation2 + $0x480] sm:$0xff] }
  0x3e   :  { %1346 = vmatprep.subr.bf16.mxu1 %v1345_v12  ;;  %v111_v12 = vld [vmem:[#allocation2 + $0x270] sm:$0xff]  ;;  %v1365_v16 = vpack.c.bf16 %v160_v8, %v159_v7  ;;  %v144_v17 = vld [vmem:[#allocation2 + $0x378] sm:$0xff]  ;;  %v161_v23 = vld [vmem:[#allocation2 + $0x400] sm:$0xff] }
  0x3f   :  { %1316 = vmatpush3.bf16.msra.mxu0 %v1315_v19  ;;  %v143_v15 = vld [vmem:[#allocation2 + $0x370] sm:$0xff]  ;;  %v178_v19 = vld [vmem:[#allocation2 + $0x488] sm:$0xff]  ;;  %v1335_v22 = vpack.c.bf16 %v112_v14, %v111_v12  ;;  %v193_v27 = vld [vmem:[#allocation2 + $0x500] sm:$0xff] }
  0x40   :  { %1318 = vmatprep.subr.bf16.mxu0 %v1317_v21  ;;  %v210_v21 = vld [vmem:[#allocation2 + $0x588] sm:$0xff]  ;;  %v1367_v24 = vpack.c.bf16 %v144_v17, %v143_v15  ;;  %v179_v30 = vld [vmem:[#allocation2 + $0x490] sm:$0xff]  ;;  %v180_v31 = vld [vmem:[#allocation2 + $0x498] sm:$0xff] }
  0x41   :  { %1348 = vmatpush3.bf16.msra.mxu1 %v1347_v20  ;;  %v209_v20 = vld [vmem:[#allocation2 + $0x580] sm:$0xff]  ;;  %v162_v26 = vld [vmem:[#allocation2 + $0x408] sm:$0xff]  ;;  %v212_v34 = vld [vmem:[#allocation2 + $0x598] sm:$0xff]  ;;  %v1373_v38 = vpack.c.bf16 %v180_v31, %v179_v30 }
  0x42   :  { %1350 = vmatprep.subr.bf16.mxu1 %v1349_v25  ;;  %v1369_v25 = vpack.c.bf16 %v178_v19, %v177_v18  ;;  %v194_v28 = vld [vmem:[#allocation2 + $0x508] sm:$0xff]  ;;  %v1401_v29 = vpack.c.bf16 %v210_v21, %v209_v20  ;;  %v31_v37 = vld [vmem:[%s1658_s0 + $0x10] sm:$0xff]  ;;  %v196_v46 = vld [vmem:[#allocation2 + $0x518] sm:$0xff] }
  0x43   :  { %1320 = vmatpush3.bf16.msra.mxu0 %v1319_v32  ;;  %v211_v32 = vld [vmem:[#allocation2 + $0x590] sm:$0xff]  ;;  %v1615_v42 = vrot.slane %v31_v37, %v1591_v13  ;;  %v334_v43 = vcombine.high %v31_v37, %v31_v37  ;;  %v181_v47 = vld [vmem:[#allocation2 + $0x4a0] sm:$0xff]  ;;  %v166_v57 = vld [vmem:[#allocation2 + $0x428] sm:$0xff] }
  0x44   :  { %1322 = vmatprep.subr.bf16.mxu0 %v1321_v36  ;;  %v1403_v36 = vpack.c.bf16 %v194_v28, %v193_v27  ;;  %v163_v39 = vld [vmem:[#allocation2 + $0x410] sm:$0xff]  ;;  %v1405_v44 = vpack.c.bf16 %v212_v34, %v211_v32  ;;  %v213_v49 = vld [vmem:[#allocation2 + $0x5a0] sm:$0xff]  ;;  %v198_v60 = vld [vmem:[#allocation2 + $0x528] sm:$0xff] }
  0x45   :  { %1352 = vmatpush3.bf16.msra.mxu1 %v1351_v35  ;;  %v1371_v35 = vpack.c.bf16 %v162_v26, %v161_v23  ;;  %v195_v41 = vld [vmem:[#allocation2 + $0x510] sm:$0xff]  ;;  %v1621_v52 = vrot.slane %v334_v43, %v1591_v13  ;;  %v165_v56 = vld [vmem:[#allocation2 + $0x420] sm:$0xff]  ;;  %v216_v0 = vld [vmem:[#allocation2 + $0x5b8] sm:$0xff] }
  0x46   :  { %1354 = vmatprep.subr.bf16.mxu1 %v1353_v40  ;;  %v164_v40 = vld [vmem:[#allocation2 + $0x418] sm:$0xff]  ;;  %v1407_v54 = vpack.c.bf16 %v196_v46, %v195_v41  ;;  %v197_v58 = vld [vmem:[#allocation2 + $0x520] sm:$0xff]  ;;  %v199_v5 = vld [vmem:[#allocation2 + $0x530] sm:$0xff] }
  0x47   :  { %1324 = vmatpush3.bf16.msra.mxu0 %v1323_v48  ;;  %v182_v48 = vld [vmem:[#allocation2 + $0x4a8] sm:$0xff]  ;;  %v1375_v53 = vpack.c.bf16 %v164_v40, %v163_v39  ;;  %v1411_v1 = vpack.c.bf16 %v198_v60, %v197_v58  ;;  %v168_v4 = vld [vmem:[#allocation2 + $0x438] sm:$0xff]  ;;  %v185_v8 = vld [vmem:[#allocation2 + $0x4c0] sm:$0xff] }
  0x48   :  { %1326 = vmatprep.subr.bf16.mxu0 %v1325_v51  ;;  %v349_v51 = vcombine.high %v1615_v42, %v1615_v42  ;;  %v200_v7 = vld [vmem:[#allocation2 + $0x538] sm:$0xff]  ;;  %v170_v17 = vld [vmem:[#allocation2 + $0x448] sm:$0xff]  ;;  %v201_v18 = vld [vmem:[#allocation2 + $0x540] sm:$0xff] }
  0x49   :  { %1356 = vmatpush3.bf16.msra.mxu1 %v1355_v50  ;;  %v214_v50 = vld [vmem:[#allocation2 + $0x5a8] sm:$0xff]  ;;  %v1415_v14 = vpack.c.bf16 %v200_v7, %v199_v5  ;;  %v187_v21 = vld [vmem:[#allocation2 + $0x4d0] sm:$0xff]  ;;  %v204_v32 = vld [vmem:[#allocation2 + $0x558] sm:$0xff] }
  0x4a   :  { %1358 = vmatprep.subr.bf16.mxu1 %v1357_v55  ;;  %v1377_v55 = vpack.c.bf16 %v182_v48, %v181_v47  ;;  %v1409_v59 = vpack.c.bf16 %v214_v50, %v213_v49  ;;  %v202_v20 = vld [vmem:[#allocation2 + $0x548] sm:$0xff]  ;;  %v219_v23 = vld [vmem:[#allocation2 + $0x5d0] sm:$0xff]  ;;  %v189_v34 = vld [vmem:[#allocation2 + $0x4e0] sm:$0xff] }
  0x4b   :  { %1328 = vmatpush3.bf16.msra.mxu0 %v1327_v61  ;;  %v183_v61 = vld [vmem:[#allocation2 + $0x4b0] sm:$0xff]  ;;  %v1419_v26 = vpack.c.bf16 %v202_v20, %v201_v18  ;;  %v222_v37 = vld [vmem:[#allocation2 + $0x5e8] sm:$0xff]  ;;  %v173_v41 = vld [vmem:[#allocation2 + $0x460] sm:$0xff] }
  0x4c   :  { %1330 = vmatprep.subr.bf16.mxu0 %v1329_v63  ;;  %v215_v63 = vld [vmem:[#allocation2 + $0x5b0] sm:$0xff]  ;;  %v174_v43 = vld [vmem:[#allocation2 + $0x468] sm:$0xff]  ;;  %v192_v49 = vld [vmem:[#allocation2 + $0x4f8] sm:$0xff] }
  0x4d   :  { %1360 = vmatpush3.bf16.msra.mxu1 %v1359_v62  ;;  %v184_v62 = vld [vmem:[#allocation2 + $0x4b8] sm:$0xff]  ;;  %v1413_v6 = vpack.c.bf16 %v216_v0, %v215_v63  ;;  %v171_v28 = vld [vmem:[#allocation2 + $0x450] sm:$0xff]  ;;  %v206_v47 = vld [vmem:[#allocation2 + $0x568] sm:$0xff] }
  0x4e   :  { %1362 = vmatprep.subr.bf16.mxu1 %v1361_v3  ;;  %v1381_v2 = vpack.c.bf16 %v184_v62, %v183_v61  ;;  %v167_v3 = vld [vmem:[#allocation2 + $0x430] sm:$0xff]  ;;  %v176_v58 = vld [vmem:[#allocation2 + $0x478] sm:$0xff]  ;;  %v241_v61 = vld [vmem:[#allocation2 + $0x680] sm:$0xff] }
  0x4f   :  { %1332 = vmatpush3.bf16.msra.mxu0 %v1331_v9  ;;  %v186_v9 = vld [vmem:[#allocation2 + $0x4c8] sm:$0xff]  ;;  %v1383_v12 = vpack.c.bf16 %v168_v4, %v167_v3  ;;  %v203_v30 = vld [vmem:[#allocation2 + $0x550] sm:$0xff]  ;;  %v208_v60 = vld [vmem:[#allocation2 + $0x578] sm:$0xff] }
  0x50   :  { %1334 = vmatprep.subr.bf16.mxu0 %v1333_v11  ;;  %v218_v11 = vld [vmem:[#allocation2 + $0x5c8] sm:$0xff]  ;;  %v1385_v15 = vpack.c.bf16 %v186_v9, %v185_v8  ;;  %v1423_v39 = vpack.c.bf16 %v204_v32, %v203_v30  ;;  %v191_v48 = vld [vmem:[#allocation2 + $0x4f0] sm:$0xff]  ;;  %v273_v63 = vld [vmem:[#allocation2 + $0x780] sm:$0xff] }
  0x51   :  { %1364 = vmatpush3.bf16.msra.mxu1 %v1363_v10  ;;  %v217_v10 = vld [vmem:[#allocation2 + $0x5c0] sm:$0xff]  ;;  %v223_v50 = vld [vmem:[#allocation2 + $0x5f0] sm:$0xff]  ;;  %v242_v62 = vld [vmem:[#allocation2 + $0x688] sm:$0xff] }
  0x52   :  { %1366 = vmatprep.subr.bf16.mxu1 %v1365_v16  ;;  %v169_v16 = vld [vmem:[#allocation2 + $0x440] sm:$0xff]  ;;  %v1417_v19 = vpack.c.bf16 %v218_v11, %v217_v10  ;;  %v274_v0 = vld [vmem:[#allocation2 + $0x788] sm:$0xff]  ;;  %v1433_v3 = vpack.c.bf16 %v242_v62, %v241_v61  ;;  %v243_v9 = vld [vmem:[#allocation2 + $0x690] sm:$0xff] }
  0x53   :  { %1336 = vmatpush3.bf16.msra.mxu0 %v1335_v22  ;;  %v188_v22 = vld [vmem:[#allocation2 + $0x4d8] sm:$0xff]  ;;  %v225_v4 = vld [vmem:[#allocation2 + $0x600] sm:$0xff]  ;;  %v226_v5 = vld [vmem:[#allocation2 + $0x608] sm:$0xff]  ;;  %v1465_v7 = vpack.c.bf16 %v274_v0, %v273_v63 }
  0x54   :  { %1370 = vmatprep.subr.bf16.mxu0 %v1369_v25  ;;  %v1387_v25 = vpack.c.bf16 %v170_v17, %v169_v16  ;;  %v1389_v27 = vpack.c.bf16 %v188_v22, %v187_v21  ;;  %v258_v8 = vld [vmem:[#allocation2 + $0x708] sm:$0xff]  ;;  %v244_v10 = vld [vmem:[#allocation2 + $0x698] sm:$0xff]  ;;  %v1435_v16 = vpack.c.bf16 %v226_v5, %v225_v4  ;;  %v259_v21 = vld [vmem:[#allocation2 + $0x710] sm:$0xff] }
  0x55   :  { %1368 = vmatpush3.bf16.msra.mxu1 %v1367_v24  ;;  %v220_v24 = vld [vmem:[#allocation2 + $0x5d8] sm:$0xff]  ;;  %v1437_v18 = vpack.c.bf16 %v244_v10, %v243_v9  ;;  %v229_v32 = vld [vmem:[#allocation2 + $0x620] sm:$0xff]  ;;  %v266_v61 = vld [vmem:[#allocation2 + $0x748] sm:$0xff] }
  0x56   :  { %1402 = vmatprep.subr.bf16.mxu1 %v1401_v29  ;;  %589 = vmatmul.mubr.f32.vlgmr.msra.gmra.mrb[2].mxu0 %v1602_v33  ;;  %v350_v33 = vcombine.high %v1621_v52, %v1621_v52  ;;  %v172_v29 = vld [vmem:[#allocation2 + $0x458] sm:$0xff]  ;;  %v1421_v31 = vpack.c.bf16 %v220_v24, %v219_v23  ;;  %v245_v24 = vld [vmem:[#allocation2 + $0x6a0] sm:$0xff]  ;;  %v251_v62 = vld [vmem:[#allocation2 + $0x6d0] sm:$0xff] }
  0x57   :  { %1372 = vmatpush3.bf16.msra.mxu0 %v1371_v35  ;;  %728 = vmatprep.mubr.f32.mxu0 %v349_v51  ;;  %v190_v35 = vld [vmem:[#allocation2 + $0x4e8] sm:$0xff]  ;;  %v224_v51 = vld [vmem:[#allocation2 + $0x5f8] sm:$0xff]  ;;  %v283_v0 = vld [vmem:[#allocation2 + $0x7d0] sm:$0xff] }
  0x58   :  { %659 = vmatmul.mubr.f32.vlgmr.msra.gmra.mrb[2].mxu1 %v1607_v45  ;;  %1374 = vmatprep.subr.bf16.mxu0 %v1373_v38  ;;  %v1379_v45 = vpack.c.bf16 %v166_v57, %v165_v56  ;;  %v1391_v38 = vpack.c.bf16 %v172_v29, %v171_v28  ;;  %v1393_v40 = vpack.c.bf16 %v190_v35, %v189_v34  ;;  %v175_v57 = vld [vmem:[#allocation2 + $0x470] sm:$0xff]  ;;  %v228_v20 = vld [vmem:[#allocation2 + $0x618] sm:$0xff]  ;;  %v230_v34 = vld [vmem:[#allocation2 + $0x628] sm:$0xff] }
  0x59   :  { %1404 = vmatpush3.bf16.msra.mxu1 %v1403_v36  ;;  %798 = vmatprep.mubr.f32.mxu1 %v350_v33  ;;  %v221_v36 = vld [vmem:[#allocation2 + $0x5e0] sm:$0xff]  ;;  %v1397_v56 = vpack.c.bf16 %v192_v49, %v191_v48  ;;  %v207_v33 = vld [vmem:[#allocation2 + $0x570] sm:$0xff]  ;;  %v260_v23 = vld [vmem:[#allocation2 + $0x718] sm:$0xff] }
  0x5a   :  { %1406 = vmatprep.subr.bf16.mxu1 %v1405_v44  ;;  %v205_v44 = vld [vmem:[#allocation2 + $0x560] sm:$0xff]  ;;  %v1425_v46 = vpack.c.bf16 %v222_v37, %v221_v36  ;;  %v1471_v30 = vpack.c.bf16 %v260_v23, %v259_v21  ;;  %v262_v37 = vld [vmem:[#allocation2 + $0x728] sm:$0xff]  ;;  %v264_v49 = vld [vmem:[#allocation2 + $0x738] sm:$0xff] }
  0x5b   :  { %1376 = vmatpush3.bf16.msra.mxu0 %v1375_v53  ;;  %v1395_v53 = vpack.c.bf16 %v174_v43, %v173_v41  ;;  %v261_v35 = vld [vmem:[#allocation2 + $0x720] sm:$0xff]  ;;  %v1443_v41 = vpack.c.bf16 %v230_v34, %v229_v32  ;;  %v252_v63 = vld [vmem:[#allocation2 + $0x6d8] sm:$0xff]  ;;  %v235_v4 = vld [vmem:[#allocation2 + $0x650] sm:$0xff] }
  0x5c   :  { %1378 = vmatprep.subr.bf16.mxu0 %v1377_v55  ;;  %v1427_v55 = vpack.c.bf16 %v206_v47, %v205_v44  ;;  %v231_v44 = vld [vmem:[#allocation2 + $0x630] sm:$0xff]  ;;  %v236_v5 = vld [vmem:[#allocation2 + $0x658] sm:$0xff]  ;;  %v253_v9 = vld [vmem:[#allocation2 + $0x6e0] sm:$0xff] }
  0x5d   :  { %1408 = vmatpush3.bf16.msra.mxu1 %v1407_v54  ;;  %v32_v54 = vld [vmem:[%s1658_s0 + $0x18] sm:$0xff]  ;;  %v263_v47 = vld [vmem:[#allocation2 + $0x730] sm:$0xff]  ;;  %v254_v10 = vld [vmem:[#allocation2 + $0x6e8] sm:$0xff] }
  0x5e   :  { %1410 = vmatprep.subr.bf16.mxu1 %v1409_v59  ;;  %v1429_v59 = vpack.c.bf16 %v224_v51, %v223_v50  ;;  %v1630_v11 = vrot.slane %v32_v54, %v1591_v13  ;;  %v249_v50 = vld [vmem:[#allocation2 + $0x6c0] sm:$0xff]  ;;  %v250_v51 = vld [vmem:[#allocation2 + $0x6c8] sm:$0xff]  ;;  %v271_v34 = vld [vmem:[#allocation2 + $0x770] sm:$0xff] }
  0x5f   :  { %1380 = vmatpush3.bf16.msra.mxu0 %v1379_v45  ;;  %v351_v45 = vcombine.high %v32_v54, %v32_v54  ;;  %v282_v54 = vld [vmem:[#allocation2 + $0x7c8] sm:$0xff]  ;;  %v269_v21 = vld [vmem:[#allocation2 + $0x760] sm:$0xff] }
  0x60   :  { %1382 = vmatprep.subr.bf16.mxu0 %v1381_v2  ;;  %v1431_v2 = vpack.c.bf16 %v208_v60, %v207_v33  ;;  %v234_v33 = vld [vmem:[#allocation2 + $0x648] sm:$0xff] }
  0x61   :  { %1412 = vmatpush3.bf16.msra.mxu1 %v1411_v1  ;;  %v1399_v1 = vpack.c.bf16 %v176_v58, %v175_v57  ;;  %v1449_v57 = vpack.c.bf16 %v250_v51, %v249_v50  ;;  %v233_v58 = vld [vmem:[#allocation2 + $0x640] sm:$0xff]  ;;  %v270_v23 = vld [vmem:[#allocation2 + $0x768] sm:$0xff] }
  0x62   :  { %1414 = vmatprep.subr.bf16.mxu1 %v1413_v6  ;;  %v257_v6 = vld [vmem:[#allocation2 + $0x700] sm:$0xff] }
  0x63   :  { %1384 = vmatpush3.bf16.msra.mxu0 %v1383_v12  ;;  %v275_v12 = vld [vmem:[#allocation2 + $0x790] sm:$0xff]  ;;  %v1467_v17 = vpack.c.bf16 %v258_v8, %v257_v6  ;;  %v268_v8 = vld [vmem:[#allocation2 + $0x758] sm:$0xff] }
  0x64   :  { %1386 = vmatprep.subr.bf16.mxu0 %v1385_v15  ;;  %v1633_v15 = vrot.slane %v351_v45, %v1591_v13  ;;  %v277_v13 = vld [vmem:[#allocation2 + $0x7a0] sm:$0xff]  ;;  %v284_v45 = vld [vmem:[#allocation2 + $0x7d8] sm:$0xff]  ;;  %v267_v6 = vld [vmem:[#allocation2 + $0x750] sm:$0xff] }
  0x65   :  { %1416 = vmatpush3.bf16.msra.mxu1 %v1415_v14  ;;  %v276_v14 = vld [vmem:[#allocation2 + $0x798] sm:$0xff] }
  0x66   :  { %1418 = vmatprep.subr.bf16.mxu1 %v1417_v19  ;;  %v227_v19 = vld [vmem:[#allocation2 + $0x610] sm:$0xff]  ;;  %v1469_v22 = vpack.c.bf16 %v276_v14, %v275_v12  ;;  %v367_v28 = vcombine.high %v1633_v15, %v1633_v15  ;;  %v285_v12 = vld [vmem:[#allocation2 + $0x7e0] sm:$0xff]  ;;  %v286_v14 = vld [vmem:[#allocation2 + $0x7e8] sm:$0xff] }
  0x67   :  { %1388 = vmatpush3.bf16.msra.mxu0 %v1387_v25  ;;  %v246_v25 = vld [vmem:[#allocation2 + $0x6a8] sm:$0xff]  ;;  %v1439_v29 = vpack.c.bf16 %v228_v20, %v227_v19  ;;  %v237_v19 = vld [vmem:[#allocation2 + $0x660] sm:$0xff] }
  0x68   :  { %1390 = vmatprep.subr.bf16.mxu0 %v1389_v27  ;;  %v278_v27 = vld [vmem:[#allocation2 + $0x7a8] sm:$0xff] }
  0x69   :  { %1420 = vmatpush3.bf16.msra.mxu1 %v1419_v26  ;;  %v366_v26 = vcombine.high %v1630_v11, %v1630_v11  ;;  %v1473_v36 = vpack.c.bf16 %v278_v27, %v277_v13  ;;  %v238_v20 = vld [vmem:[#allocation2 + $0x668] sm:$0xff]  ;;  %v288_v13 = vld [vmem:[#allocation2 + $0x7f8] sm:$0xff] }
  0x6a   :  { %1422 = vmatprep.subr.bf16.mxu1 %v1421_v31  ;;  %v1441_v31 = vpack.c.bf16 %v246_v25, %v245_v24  ;;  %v255_v24 = vld [vmem:[#allocation2 + $0x6f0] sm:$0xff]  ;;  %v256_v25 = vld [vmem:[#allocation2 + $0x6f8] sm:$0xff]  ;;  %v1459_v27 = vpack.c.bf16 %v238_v20, %v237_v19 }
  0x6b   :  { %1392 = vmatpush3.bf16.msra.mxu0 %v1391_v38  ;;  %v248_v38 = vld [vmem:[#allocation2 + $0x6b8] sm:$0xff] }
  0x6c   :  { %1394 = vmatprep.subr.bf16.mxu0 %v1393_v40  ;;  %v280_v40 = vld [vmem:[#allocation2 + $0x7b8] sm:$0xff] }
  0x6d   :  { %1424 = vmatpush3.bf16.msra.mxu1 %v1423_v39  ;;  %v279_v39 = vld [vmem:[#allocation2 + $0x7b0] sm:$0xff] }
  0x6e   :  { %1426 = vmatprep.subr.bf16.mxu1 %v1425_v46  ;;  %v232_v46 = vld [vmem:[#allocation2 + $0x638] sm:$0xff]  ;;  %v1477_v48 = vpack.c.bf16 %v280_v40, %v279_v39 }
  0x6f   :  { %1396 = vmatpush3.bf16.msra.mxu0 %v1395_v53  ;;  %v281_v53 = vld [vmem:[#allocation2 + $0x7c0] sm:$0xff] }
  0x70   :  { %1398 = vmatprep.subr.bf16.mxu0 %v1397_v56  ;;  %v1479_v56 = vpack.c.bf16 %v264_v49, %v263_v47  ;;  %v1481_v60 = vpack.c.bf16 %v282_v54, %v281_v53 }
  0x71   :  { %1428 = vmatpush3.bf16.msra.mxu1 %v1427_v55  ;;  %v1447_v55 = vpack.c.bf16 %v232_v46, %v231_v44 }
  0x72   :  { %1430 = vmatprep.subr.bf16.mxu1 %v1429_v59  ;;  %v265_v59 = vld [vmem:[#allocation2 + $0x740] sm:$0xff] }
  0x73   :  { %1400 = vmatpush3.bf16.msra.mxu0 %v1399_v1  ;;  %v1451_v1 = vpack.c.bf16 %v234_v33, %v233_v58 }
  0x74   :  { %1434 = vmatprep.subr.bf16.mxu0 %v1433_v3  ;;  %v1453_v3 = vpack.c.bf16 %v252_v63, %v251_v62 }
  0x75   :  { %1432 = vmatpush3.bf16.msra.mxu1 %v1431_v2  ;;  %v1483_v2 = vpack.c.bf16 %v266_v61, %v265_v59 }
  0x76   :  { %1466 = vmatprep.subr.bf16.mxu1 %v1465_v7  ;;  %729 = vmatmul.mubr.f32.vlgmr.msra.gmra.mrb[4].mxu0 %v1615_v42  ;;  %v247_v42 = vld [vmem:[#allocation2 + $0x6b0] sm:$0xff]  ;;  %v1485_v7 = vpack.c.bf16 %v284_v45, %v283_v0 }
  0x77   :  { %1436 = vmatpush3.bf16.msra.mxu0 %v1435_v16  ;;  %868 = vmatprep.mubr.f32.mxu0 %v366_v26  ;;  %v1445_v43 = vpack.c.bf16 %v248_v38, %v247_v42  ;;  %v1455_v16 = vpack.c.bf16 %v236_v5, %v235_v4  ;;  %v287_v26 = vld [vmem:[#allocation2 + $0x7f0] sm:$0xff]  ;;  %v960_v38 = vld [vmem:[%s1660_s2] ss:$0 sm:$0xff]  ;;  %s1558_s2 = smov [#allocation5]  }
  0x78   :  { %799 = vmatmul.mubr.f32.vlgmr.msra.gmra.mrb[4].mxu1 %v1621_v52  ;;  %1438 = vmatprep.subr.bf16.mxu0 %v1437_v18  ;;  %v1475_v52 = vpack.c.bf16 %v262_v37, %v261_v35  ;;  %v1457_v18 = vpack.c.bf16 %v254_v10, %v253_v9  ;;  %v1493_v32 = vpack.c.bf16 %v288_v13, %v287_v26  ;;  %v272_v35 = vld [vmem:[#allocation2 + $0x778] sm:$0xff]  ;;  %s951_s7 = sshll.u32 %s1558_s2, 4  ;;  %s952_s7 = int_to_ptr.vmem [resolvable:$true] %s951_s7 }
  0x79   :  { %1468 = vmatpush3.bf16.msra.mxu1 %v1467_v17  ;;  %938 = vmatprep.mubr.f32.mxu1 %v367_v28  ;;  %v1487_v17 = vpack.c.bf16 %v268_v8, %v267_v6  ;;  %v1491_v28 = vpack.c.bf16 %v270_v23, %v269_v21  ;;  %v1495_v37 = vpack.c.bf16 %v272_v35, %v271_v34  ;;  %s1528_s8 = scalar_lea.vmem %s952_s7, 32  ;;  %p1533_p9 = scmp.lt.s32.totalorder %s952_s7, %s952_s7 }
  0x7a   :  { %1470 = vmatprep.subr.bf16.mxu1 %v1469_v22  ;;  %v1489_v22 = vpack.c.bf16 %v286_v14, %v285_v12  ;;  %p1529_p8 = scmp.ne.s32.totalorder %s952_s7, %s1528_s8  ;;  %p1534_p10 = scmp.lt.s32.totalorder %s1528_s8, %s1528_s8 }
  0x7b   :  { %1440 = vmatpush3.bf16.msra.mxu0 %v1439_v29  ;;  %v1461_v29 = vpack.c.bf16 %v256_v25, %v255_v24 }
  0x7c   :  { %1442 = vmatprep.subr.bf16.mxu0 %v1441_v31  ;;  %v240_v31 = vld [vmem:[#allocation2 + $0x678] sm:$0xff]  ;;  %p1535_p11 = por %p1534_p10, %p1533_p9 }
  0x7d   :  { %1472 = vmatpush3.bf16.msra.mxu1 %v1471_v30  ;;  %v239_v30 = vld [vmem:[#allocation2 + $0x670] sm:$0xff] }
  0x7e   :  { %1474 = vmatprep.subr.bf16.mxu1 %v1473_v36  ;;  %v1463_v36 = vpack.c.bf16 %v240_v31, %v239_v30  ;;  %p1536_p12 = pnand %p1535_p11, %p1529_p8 }
  0x7f   :  { %1444 = vmatpush3.bf16.msra.mxu0 %v1443_v41 }
  0x80   :  { %1446 = vmatprep.subr.bf16.mxu0 %v1445_v43 }
  0x81   :  { %1476 = vmatpush3.bf16.msra.mxu1 %v1475_v52 }
  0x82   :  { %1478 = vmatprep.subr.bf16.mxu1 %v1477_v48 }
  0x83   :  { %1448 = vmatpush3.bf16.msra.mxu0 %v1447_v55 }
  0x84   :  { %1450 = vmatprep.subr.bf16.mxu0 %v1449_v57 }
  0x85   :  { %1480 = vmatpush3.bf16.msra.mxu1 %v1479_v56 }
  0x86   :  { %1482 = vmatprep.subr.bf16.mxu1 %v1481_v60 }
  0x87   :  { %1452 = vmatpush3.bf16.msra.mxu0 %v1451_v1 }
  0x88   :  { %1454 = vmatprep.subr.bf16.mxu0 %v1453_v3 }
  0x89   :  { %1484 = vmatpush3.bf16.msra.mxu1 %v1483_v2 }
  0x8a   :  { %1486 = vmatprep.subr.bf16.mxu1 %v1485_v7 }
  0x8b   :  { %1456 = vmatpush3.bf16.msra.mxu0 %v1455_v16 }
  0x8c   :  { %1458 = vmatprep.subr.bf16.mxu0 %v1457_v18 }
  0x8d   :  { %1488 = vmatpush3.bf16.msra.mxu1 %v1487_v17 }
  0x8e   :  { %1490 = vmatprep.subr.bf16.mxu1 %v1489_v22 }
  0x8f   :  { %1460 = vmatpush3.bf16.msra.mxu0 %v1459_v27 }
  0x90   :  { %1462 = vmatprep.subr.bf16.mxu0 %v1461_v29 }
  0x91   :  { %1492 = vmatpush3.bf16.msra.mxu1 %v1491_v28 }
  0x92   :  { %1494 = vmatprep.subr.bf16.mxu1 %v1493_v32 }
  0x93   :  { %1464 = vmatpush3.bf16.msra.mxu0 %v1463_v36 }
  0x95   :  { %1496 = vmatpush3.bf16.msra.mxu1 %v1495_v37 }
  0x96   :  { %869 = vmatmul.mubr.f32.vlgmr.msra.gmra.mrb[6].mxu0 %v1630_v11 }
  0x98   :  { %939 = vmatmul.mubr.f32.vlgmr.msra.gmra.mrb[6].mxu1 %v1633_v15 }
 0x109   :  { %v993_v42 = vpop.f32.mrb[0].mxu0 }
 0x10a   :  { %v994_v39 = vpop.f32.mrb[1].mxu0 }
 0x10b   :  { %v1028_v40 = vpop.f32.mrb[0].mxu1  ;;  %v995_v41 = vadd.f32 %v994_v39, %v993_v42 }
 0x10c   :  { %v1029_v52 = vpop.f32.mrb[1].mxu1 }
 0x10d   :  { %v1030_v43 = vadd.f32 %v1029_v52, %v1028_v40  ;;  %v451_v44 = vadd.f32 %v995_v41, %v960_v38 }
 0x10f   :  { %v521_v46 = vadd.f32 %v1030_v43, %v451_v44 }
 0x129   :  { %v1063_v47 = vpop.f32.mrb[2].mxu0 }
 0x12a   :  { %v1064_v48 = vpop.f32.mrb[3].mxu0 }
 0x12b   :  { %v1098_v49 = vpop.f32.mrb[2].mxu1  ;;  %v1065_v50 = vadd.f32 %v1064_v48, %v1063_v47 }
 0x12c   :  { %v1099_v51 = vpop.f32.mrb[3].mxu1 }
 0x12d   :  { %v1100_v11 = vadd.f32 %v1099_v51, %v1098_v49  ;;  %v591_v53 = vadd.f32 %v1065_v50, %v521_v46 }
 0x12f   :  { %v661_v15 = vadd.f32 %v1100_v11, %v591_v53 }
 0x149   :  { %v1133_v54 = vpop.f32.mrb[4].mxu0 }
 0x14a   :  { %v1134_v55 = vpop.f32.mrb[5].mxu0 }
 0x14b   :  { %v1168_v56 = vpop.f32.mrb[4].mxu1  ;;  %v1135_v57 = vadd.f32 %v1134_v55, %v1133_v54 }
 0x14c   :  { %v1169_v58 = vpop.f32.mrb[5].mxu1 }
 0x14d   :  { %v1170_v33 = vadd.f32 %v1169_v58, %v1168_v56  ;;  %v731_v59 = vadd.f32 %v1135_v57, %v661_v15 }
 0x14f   :  { %v801_v60 = vadd.f32 %v1170_v33, %v731_v59 }
 0x169   :  { %v1203_v61 = vpop.f32.mrb[6].mxu0 }
 0x16a   :  { %v1204_v62 = vpop.f32.mrb[7].mxu0 }
 0x16b   :  { %v1238_v63 = vpop.f32.mrb[6].mxu1  ;;  %v1205_v0 = vadd.f32 %v1204_v62, %v1203_v61 }
 0x16c   :  { %v1239_v45 = vpop.f32.mrb[7].mxu1 }
 0x16d   :  { %v1240_v1 = vadd.f32 %v1239_v45, %v1238_v63  ;;  %v871_v2 = vadd.f32 %v1205_v0, %v801_v60 }
 0x16f   :  { %v941_v3 = vadd.f32 %v1240_v1, %v871_v2 }
 0x171   :  { %944 = vst [vmem:[#allocation5] sm:$0x3] %v941_v3 }
 0x172   :  { %1539 = shalt.err (!%p1536_p12)
}
 0x173   :  { %s1540_s11 = scalar_lea.hbm %s1661_s3, 32 }
 0x174   :  { %p1541_p13 = scmp.ne.s32.totalorder %s1661_s3, %s1540_s11  ;;  %p1544_p0 = scmp.lt.u32.totalorder %s1540_s11, %s1661_s3 }
 0x176   :  { %p1546_p1 = pnand %p1544_p0, %p1541_p13 }
 0x178   :  { %1549 = shalt.err (!%p1546_p1)
}
 0x179   :  { %954 = dma.vmem_to_hbm [thread:$0]  %s952_s7, 32, %s1661_s3, [#allocation4]  }
 0x17a   :  { %1552 = dma.done.wait [#allocation4], 32  }
 0x17b   :  { %1553 = vsyncadd [#allocation4], 4294967264 }
 0x17c   :  { %958 = vsyncpa [#allocation3], 1 }
 0x17d   :  { %959 = vsyncpa [#allocation4], 1 }

</bundles_post_ra>
